<compile_context>
chip_gen: v5e
topology: v5e:2x2
jax: 0.10.0
libtpu: 0.0.40
codegen_flags: <defaults>
</compile_context>

<pallas_src>
import functools

import jax
import jax.numpy as jnp
from jax import lax
from jax.experimental import pallas as pl
from jax.experimental.pallas import tpu as pltpu


# ----------------------------------------------------------------------------
# Fused MBConv kernel: one grid step == one batch element, all stages in VMEM.
# Layout: channel-major (channels, flat_spatial); flat_spatial uses padded row
# width Wrow so every conv tap is a contiguous lane slice.
# ----------------------------------------------------------------------------
def _mbconv_kernel(*refs, H, W, Cin, hidden, Cout, k, stride, padding,
                   Hout, Wout, Wrow, L1, L2, Ldw, expand, fast_h1,
                   need_pool_mask, use_residual):
    f32 = jnp.float32
    bf16 = jnp.bfloat16
    it = iter(refs)
    if expand:
        x1p_ref = next(it)        # (1, Cin, L1tot)  zero-padded, flattened
        w_exp_ref = next(it)      # (9, hidden, Cin) bf16, BN-scale folded
        b_exp_ref = next(it)      # (hidden, 1)
        if fast_h1:
            mask_h1_ref = next(it)  # (1, L1) 1.0 on valid columns
    else:
        x2p_ref = next(it)        # (1, hidden, Ldw) zero-padded, flattened
    w_dw_ref = next(it)           # (hidden, k*k)  BN-scale folded
    b_dw_ref = next(it)           # (hidden, 1)
    if need_pool_mask:
        mask_pool_ref = next(it)  # (1, L2) 1.0 on valid columns
    w_se1_ref = next(it)          # (hidden, reduced)
    b_se1_ref = next(it)          # (1, reduced)
    w_se2_ref = next(it)          # (hidden, reduced)
    b_se2_ref = next(it)          # (hidden, 1)
    w_pw_ref = next(it)           # (Cout, hidden) bf16, BN-scale folded
    b_pw_ref = next(it)           # (Cout, 1)
    if use_residual:
        x_res_ref = next(it)      # (1, Cin, L2)
    o_ref = next(it)              # (1, Cout, L2)
    if expand:
        dwpad_ref = next(it)      # (hidden, Ldw) scratch

    Wp1 = W + 2                   # expand conv is always 3x3 / stride 1 / pad 1
    Wp2 = W + 2 * padding
    Hp2 = H + 2 * padding

    # ---- Stage 1: 3x3 expand conv (contiguous slab taps -> MXU) + BN + SiLU
    if expand:
        acc1 = jnp.zeros((hidden, L1), f32)
        for kh in range(3):
            for kw in range(3):
                t = kh * 3 + kw
                s = kh * Wp1 + kw
                slab = x1p_ref[0, :, s:s + L1].astype(bf16)       # (Cin, L1)
                acc1 = acc1 + jnp.dot(w_exp_ref[t], slab,
                                      preferred_element_type=f32)
        h1 = acc1 + b_exp_ref[...]
        h1 = h1 * jax.nn.sigmoid(h1)                               # SiLU

        # ---- write h1 into the zero-padded depthwise source (scratch) ----
        if fast_h1:
            # padding == 1  =>  Wp2 == Wp1: one contiguous store handles the
            # interior and the horizontal pad columns (garbage cols masked to
            # zero land exactly on pad positions). Only the tiny head/tail pad
            # regions are zeroed each step.
            off = padding * Wp2 + padding
            dwpad_ref[:, 0:off] = jnp.zeros((hidden, off), f32)
            dwpad_ref[:, off + L1:Ldw] = jnp.zeros(
                (hidden, Ldw - off - L1), f32)
            dwpad_ref[:, off:off + L1] = h1 * mask_h1_ref[...]
        else:
            # General (padding != 1) fallback: per-row copies of the valid
            # columns into the padded buffer.
            dwpad_ref[...] = jnp.zeros_like(dwpad_ref)
            for h in range(H):
                src = h * Wp1
                dst = (padding + h) * Wp2 + padding
                dwpad_ref[:, dst:dst + W] = h1[:, src:src + W]

        def dw_read(a, b):
            return dwpad_ref[:, a:b]
    else:
        # hidden == Cin; the (already padded) input block is the dw source.
        def dw_read(a, b):
            return x2p_ref[0, :, a:b]

    # ---- Stage 2: depthwise k x k conv + BN bias + SiLU (VPU) --------------
    acc2 = jnp.zeros((hidden, L2), f32)
    if stride == 1:
        for kh in range(k):
            for kw in range(k):
                t = kh * k + kw
                s = kh * Wp2 + kw
                tap = dw_read(s, s + L2)                  # contiguous slab
                acc2 = acc2 + tap * w_dw_ref[:, t:t + 1]
    else:
        # TODO(synk): stride>1 path uses strided slices + reshapes (relayouts);
        # not exercised by this module config.
        full = dw_read(0, Hp2 * Wp2).reshape(hidden, Hp2, Wp2)
        for kh in range(k):
            for kw in range(k):
                t = kh * k + kw
                tap = lax.slice(full, (0, kh, kw),
                                (hidden, kh + (Hout - 1) * stride + 1,
                                 kw + (Wout - 1) * stride + 1),
                                (1, stride, stride))
                acc2 = acc2 + tap.reshape(hidden, L2) * w_dw_ref[:, t:t + 1]
    y2 = acc2 + b_dw_ref[...]
    y2 = y2 * jax.nn.sigmoid(y2)                                   # (hidden, L2)

    # ---- Stage 3: SqueezeExcitation (tiny reductions on VPU/XLU) ----------
    y2p = y2 * mask_pool_ref[...] if need_pool_mask else y2
    pooled = jnp.sum(y2p, axis=1, keepdims=True) * (1.0 / (Hout * Wout))
    se_h = (jnp.sum(pooled * w_se1_ref[...], axis=0, keepdims=True)
            + b_se1_ref[...])                                      # (1, reduced)
    se_h = se_h * jax.nn.sigmoid(se_h)                             # SiLU
    se_s = jax.nn.sigmoid(
        jnp.sum(w_se2_ref[...] * se_h, axis=1, keepdims=True)
        + b_se2_ref[...])                                          # (hidden, 1)

    # ---- Stage 4: transposed 1x1 projection + BN bias (+ residual) --------
    y3 = (y2 * se_s).astype(bf16)                                  # (hidden, L2)
    y = jnp.dot(w_pw_ref[...], y3, preferred_element_type=f32)     # (Cout, L2)
    y = y + b_pw_ref[...]
    if use_residual:
        y = y + x_res_ref[0].astype(f32)
    o_ref[0] = y.astype(o_ref.dtype)                               # lane-dense


# ----------------------------------------------------------------------------
# Wrapper: NCHW in / NCHW out (no transposes), one fused pallas_call over N.
# ----------------------------------------------------------------------------
def inverted_residual_forward(x_nchw, params, *, kernel_size, stride, padding,
                              expand, use_residual):
    N, Cin, H, W = x_nchw.shape
    k = kernel_size
    hidden = params["w_dw"].shape[-1]
    Cout = params["w_pw"].shape[-1]
    Hout = (H + 2 * padding - k) // stride + 1
    Wout = (W + 2 * padding - k) // stride + 1
    if not expand:
        assert hidden == Cin, "expand=False requires hidden == in_channels"
    if use_residual:
        assert stride == 1 and Cin == Cout and Hout == H and Wout == W

    f32, bf16 = jnp.float32, jnp.bfloat16
    Wp1 = W + 2                      # expand conv geometry (always 3x3/s1/p1)
    Wp2 = W + 2 * padding
    Hp2 = H + 2 * padding

    if stride == 1:
        Wrow = Wp2                               # padded-row-width coordinates
        L2 = Hout * Wrow
        Ldw = Hout * Wp2 + (k - 1) * (Wp2 + 1)   # + tap-overrun slack
    else:
        Wrow = Wout                              # exact coordinates
        L2 = Hout * Wout
        Ldw = Hp2 * Wp2
    L1 = H * Wp1
    L1tot = H * Wp1 + 2 * (Wp1 + 1)              # expand-conv tap-overrun slack
    fast_h1 = expand and (padding == 1)          # Wp2 == Wp1 single-store path
    need_pool_mask = Wrow > Wout

    args, in_specs = [], []

    def add_batched(arr):                        # (N, C, L) blocks, one per step
        args.append(arr)
        in_specs.append(pl.BlockSpec((1,) + arr.shape[1:],
                                     lambda n: (n, 0, 0)))

    def add_full(arr):                           # whole (small) parameter array
        args.append(arr)
        in_specs.append(pl.BlockSpec(arr.shape,
                                     lambda n, _nd=arr.ndim: (0,) * _nd))

    x = x_nchw.astype(f32)

    if expand:
        x1p = jnp.pad(x, ((0, 0), (0, 0), (1, 1), (1, 1))).reshape(N, Cin, -1)
        x1p = jnp.pad(x1p, ((0, 0), (0, 0), (0, L1tot - x1p.shape[-1])))
        add_batched(x1p)
        # Fold BN scale into the (tap-major, transposed) expand-conv weights.
        w_exp = params["w_exp"] * params["s_exp"].reshape(1, 1, 1, hidden)
        w_exp_t = jnp.transpose(w_exp, (0, 1, 3, 2)).reshape(9, hidden, Cin)
        add_full(w_exp_t.astype(bf16))
        add_full(params["b_exp"].reshape(hidden, 1).astype(f32))
        if fast_h1:
            col = jnp.arange(L1) % Wp1
            add_full((col < W).astype(f32).reshape(1, L1))
    else:
        x2p = jnp.pad(x, ((0, 0), (0, 0), (padding, padding),
                          (padding, padding))).reshape(N, hidden, -1)
        x2p = jnp.pad(x2p, ((0, 0), (0, 0), (0, Ldw - x2p.shape[-1])))
        add_batched(x2p)

    # Depthwise weights: BN scale folded, channel-major (hidden, k*k).
    w_dw_f = params["w_dw"] * params["s_dw"].reshape(1, 1, hidden)
    add_full(jnp.transpose(w_dw_f.reshape(k * k, hidden), (1, 0)).astype(f32))
    add_full(params["b_dw"].reshape(hidden, 1).astype(f32))
    if need_pool_mask:
        col = jnp.arange(L2) % Wrow
        add_full((col < Wout).astype(f32).reshape(1, L2))
    add_full(params["w_se1"].astype(f32))                  # (hidden, reduced)
    add_full(params["b_se1"].astype(f32))                  # (1, reduced)
    add_full(params["w_se2"].T.astype(f32))                # (hidden, reduced)
    add_full(params["b_se2"].reshape(hidden, 1).astype(f32))
    # Projection: BN scale folded, transposed (Cout, hidden), bf16 for the MXU.
    w_pw_f = params["w_pw"] * params["s_pw"]
    add_full(w_pw_f.T.astype(bf16))
    add_full(params["b_pw"].reshape(Cout, 1).astype(f32))
    if use_residual:
        x_res = jnp.pad(x, ((0, 0), (0, 0), (0, 0), (0, Wrow - W)))
        add_batched(x_res.reshape(N, Cin, H * Wrow))

    out_shape = jax.ShapeDtypeStruct((N, Cout, L2), x_nchw.dtype)
    out_spec = pl.BlockSpec((1, Cout, L2), lambda n: (n, 0, 0))

    scratch = []
    if expand:
        scratch.append(pltpu.VMEM((hidden, Ldw), f32))

    kern = functools.partial(
        _mbconv_kernel, H=H, W=W, Cin=Cin, hidden=hidden, Cout=Cout, k=k,
        stride=stride, padding=padding, Hout=Hout, Wout=Wout, Wrow=Wrow,
        L1=L1, L2=L2, Ldw=Ldw, expand=expand, fast_h1=fast_h1,
        need_pool_mask=need_pool_mask, use_residual=use_residual)

    out = pl.pallas_call(
        kern,
        out_shape=out_shape,
        grid=(N,),
        in_specs=in_specs,
        out_specs=out_spec,
        scratch_shapes=scratch,
        compiler_params=pltpu.CompilerParams(
            dimension_semantics=("parallel",),
            vmem_limit_bytes=32 * 1024 * 1024),
    )(*args)

    # Drop the padded-width garbage columns (cheap slice) and emit NCHW.
    if Wrow == Wout:
        y = out.reshape(N, Cout, Hout, Wout)
    else:
        y = out.reshape(N, Cout, Hout, Wrow)[:, :, :, :Wout]
    return y.astype(x_nchw.dtype)


# ----------------------------------------------------------------------------
# Pure-JAX reference (for correctness check)
# ----------------------------------------------------------------------------
def reference_forward(x_nchw, params, *, kernel_size, stride, padding,
                      expand, use_residual):
    def bn_silu(y, s, b):
        y = y * s.reshape(1, -1, 1, 1) + b.reshape(1, -1, 1, 1)
        return y * jax.nn.sigmoid(y)

    x = x_nchw
    if expand:
        w = jnp.transpose(params["w_exp"], (3, 2, 0, 1))          # HWIO -> OIHW
        y = lax.conv_general_dilated(x, w, (1, 1), ((1, 1), (1, 1)),
                                     dimension_numbers=("NCHW", "OIHW", "NCHW"))
        x = bn_silu(y, params["s_exp"], params["b_exp"])
    C = x.shape[1]
    w_dw = jnp.transpose(params["w_dw"], (2, 0, 1))[:, None]      # (C,1,k,k)
    y = lax.conv_general_dilated(x, w_dw, (stride, stride),
                                 ((padding, padding), (padding, padding)),
                                 dimension_numbers=("NCHW", "OIHW", "NCHW"),
                                 feature_group_count=C)
    x2 = bn_silu(y, params["s_dw"], params["b_dw"])
    pooled = jnp.mean(x2, axis=(2, 3))                            # (N,C)
    h = pooled @ params["w_se1"] + params["b_se1"]
    h = h * jax.nn.sigmoid(h)
    s = jax.nn.sigmoid(h @ params["w_se2"] + params["b_se2"])
    x3 = x2 * s[:, :, None, None]
    y = jnp.einsum("nchw,co->nohw", x3, params["w_pw"])
    y = y * params["s_pw"].reshape(1, -1, 1, 1) + params["b_pw"].reshape(1, -1, 1, 1)
    if use_residual:
        y = y + x_nchw
    return y


if __name__ == "__main__":
    # Module config: InvertedResidualBlock(4, 4, kernel_size=3, stride=1,
    #                                      padding=1, expand_ratio=4, reduction=4)
    in_channels, out_channels = 4, 4
    kernel_size, stride, padding = 3, 1, 1
    expand_ratio, reduction = 4, 4
    hidden = in_channels * expand_ratio            # 16
    reduced = int(in_channels / reduction)         # 1
    expand = in_channels != hidden                 # True
    use_residual = (in_channels == out_channels) and (stride == 1)  # True

    N, H, W = 2, 16, 16
    keys = iter(jax.random.split(jax.random.PRNGKey(0), 32))

    x = jax.random.normal(next(keys), (N, in_channels, H, W), jnp.float32)

    def bn_fold(c):
        gamma = 1.0 + 0.1 * jax.random.normal(next(keys), (c,), jnp.float32)
        beta = 0.1 * jax.random.normal(next(keys), (c,), jnp.float32)
        mean = 0.1 * jax.random.normal(next(keys), (c,), jnp.float32)
        var = jnp.abs(1.0 + 0.1 * jax.random.normal(next(keys), (c,), jnp.float32))
        scale = gamma / jnp.sqrt(var + 1e-5)       # PyTorch BN eps default
        bias = beta - mean * scale
        return scale.reshape(1, c), bias.reshape(1, c)

    params = {}
    params["w_exp"] = 0.2 * jax.random.normal(next(keys), (3, 3, in_channels, hidden), jnp.float32)
    params["s_exp"], params["b_exp"] = bn_fold(hidden)
    params["w_dw"] = 0.2 * jax.random.normal(next(keys), (kernel_size, kernel_size, hidden), jnp.float32)
    params["s_dw"], params["b_dw"] = bn_fold(hidden)
    params["w_se1"] = 0.2 * jax.random.normal(next(keys), (hidden, reduced), jnp.float32)
    params["b_se1"] = 0.1 * jax.random.normal(next(keys), (1, reduced), jnp.float32)
    params["w_se2"] = 0.2 * jax.random.normal(next(keys), (reduced, hidden), jnp.float32)
    params["b_se2"] = 0.1 * jax.random.normal(next(keys), (1, hidden), jnp.float32)
    params["w_pw"] = 0.2 * jax.random.normal(next(keys), (hidden, out_channels), jnp.float32)
    params["s_pw"], params["b_pw"] = bn_fold(out_channels)

    out = inverted_residual_forward(
        x, params, kernel_size=kernel_size, stride=stride, padding=padding,
        expand=expand, use_residual=use_residual)
    out = jax.block_until_ready(out)

    ref = reference_forward(
        x, params, kernel_size=kernel_size, stride=stride, padding=padding,
        expand=expand, use_residual=use_residual)
    ref = jax.block_until_ready(ref)

    assert out.shape == (N, out_channels, H, W), out.shape
    # Tolerance accounts for bf16 MXU inputs (f32 accumulation / f32 epilogues).
    if not jnp.allclose(out, ref, rtol=2e-2, atol=2e-2):
        raise AssertionError("Pallas output does not match JAX reference")
    print("KERNEL_OK")
</pallas_src>

<mosaic_0001>
module attributes {stable_mosaic.version = 11 : i64} {
  func.func @_mbconv_kernel(%arg0: i32, %arg1: memref<1x4x326xf32, #tpu.memory_space<vmem>>, %arg2: memref<9x16x4xbf16, #tpu.memory_space<vmem>>, %arg3: memref<16x1xf32, #tpu.memory_space<vmem>>, %arg4: memref<1x288xf32, #tpu.memory_space<vmem>>, %arg5: memref<16x9xf32, #tpu.memory_space<vmem>>, %arg6: memref<16x1xf32, #tpu.memory_space<vmem>>, %arg7: memref<1x288xf32, #tpu.memory_space<vmem>>, %arg8: memref<16x1xf32, #tpu.memory_space<vmem>>, %arg9: memref<1x1xf32, #tpu.memory_space<vmem>>, %arg10: memref<16x1xf32, #tpu.memory_space<vmem>>, %arg11: memref<16x1xf32, #tpu.memory_space<vmem>>, %arg12: memref<4x16xbf16, #tpu.memory_space<vmem>>, %arg13: memref<4x1xf32, #tpu.memory_space<vmem>>, %arg14: memref<1x4x288xf32, #tpu.memory_space<vmem>>, %arg15: memref<1x4x288xf32, #tpu.memory_space<vmem>>, %arg16: memref<16x326xf32, #tpu.memory_space<vmem>>) attributes {dimension_semantics = [#tpu.dimension_semantics<parallel>], iteration_bounds = array<i64: 2>, scalar_prefetch = 0 : i64, scratch_operands = 1 : i64, tpu.core_type = #tpu.core_type<tc>, window_params = [{transform_indices = @transform_0, window_bounds = array<i64: 1, 4, 326>}, {pipeline_mode = #tpu.pipeline_mode<synchronous>, transform_indices = @transform_1, window_bounds = array<i64: 9, 16, 4>}, {pipeline_mode = #tpu.pipeline_mode<synchronous>, transform_indices = @transform_2, window_bounds = array<i64: 16, 1>}, {pipeline_mode = #tpu.pipeline_mode<synchronous>, transform_indices = @transform_3, window_bounds = array<i64: 1, 288>}, {pipeline_mode = #tpu.pipeline_mode<synchronous>, transform_indices = @transform_4, window_bounds = array<i64: 16, 9>}, {pipeline_mode = #tpu.pipeline_mode<synchronous>, transform_indices = @transform_5, window_bounds = array<i64: 16, 1>}, {pipeline_mode = #tpu.pipeline_mode<synchronous>, transform_indices = @transform_6, window_bounds = array<i64: 1, 288>}, {pipeline_mode = #tpu.pipeline_mode<synchronous>, transform_indices = @transform_7, window_bounds = array<i64: 16, 1>}, {pipeline_mode = #tpu.pipeline_mode<synchronous>, transform_indices = @transform_8, window_bounds = array<i64: 1, 1>}, {pipeline_mode = #tpu.pipeline_mode<synchronous>, transform_indices = @transform_9, window_bounds = array<i64: 16, 1>}, {pipeline_mode = #tpu.pipeline_mode<synchronous>, transform_indices = @transform_10, window_bounds = array<i64: 16, 1>}, {pipeline_mode = #tpu.pipeline_mode<synchronous>, transform_indices = @transform_11, window_bounds = array<i64: 4, 16>}, {pipeline_mode = #tpu.pipeline_mode<synchronous>, transform_indices = @transform_12, window_bounds = array<i64: 4, 1>}, {transform_indices = @transform_13, window_bounds = array<i64: 1, 4, 288>}, {transform_indices = @transform_14, window_bounds = array<i64: 1, 4, 288>}]} {
    %cst = arith.constant 0.000000e+00 : f32
    %0 = vector.broadcast %cst : f32 to vector<16x288xf32>
    %c0 = arith.constant 0 : index
    %c0_0 = arith.constant 0 : index
    %c0_1 = arith.constant 0 : index
    %1 = vector.load %arg1[%c0, %c0_0, %c0_1] : memref<1x4x326xf32, #tpu.memory_space<vmem>>, vector<1x4x288xf32>
    %2 = vector.shape_cast %1 : vector<1x4x288xf32> to vector<4x288xf32>
    %3 = arith.truncf %2 : vector<4x288xf32> to vector<4x288xbf16>
    %c0_2 = arith.constant 0 : index
    %c0_3 = arith.constant 0 : index
    %c0_4 = arith.constant 0 : index
    %4 = vector.load %arg2[%c0_2, %c0_3, %c0_4] : memref<9x16x4xbf16, #tpu.memory_space<vmem>>, vector<1x16x4xbf16>
    %5 = vector.shape_cast %4 : vector<1x16x4xbf16> to vector<16x4xbf16>
    %cst_5 = arith.constant dense<0.000000e+00> : vector<16x288xf32>
    %6 = tpu.matmul %5, %3, %cst_5 {dimension_numbers = #tpu.dot_dimension_numbers<[1], [0], [0], [1], [0, 0, 1, 1], [], []>} : vector<16x4xbf16>, vector<4x288xbf16>, vector<16x288xf32> -> vector<16x288xf32>
    %7 = arith.addf %0, %6 : vector<16x288xf32>
    %c0_6 = arith.constant 0 : index
    %c0_7 = arith.constant 0 : index
    %c1 = arith.constant 1 : index
    %8 = vector.load %arg1[%c0_6, %c0_7, %c1] : memref<1x4x326xf32, #tpu.memory_space<vmem>>, vector<1x4x288xf32>
    %9 = vector.shape_cast %8 : vector<1x4x288xf32> to vector<4x288xf32>
    %10 = arith.truncf %9 : vector<4x288xf32> to vector<4x288xbf16>
    %c1_8 = arith.constant 1 : index
    %c0_9 = arith.constant 0 : index
    %c0_10 = arith.constant 0 : index
    %11 = vector.load %arg2[%c1_8, %c0_9, %c0_10] : memref<9x16x4xbf16, #tpu.memory_space<vmem>>, vector<1x16x4xbf16>
    %12 = vector.shape_cast %11 : vector<1x16x4xbf16> to vector<16x4xbf16>
    %cst_11 = arith.constant dense<0.000000e+00> : vector<16x288xf32>
    %13 = tpu.matmul %12, %10, %cst_11 {dimension_numbers = #tpu.dot_dimension_numbers<[1], [0], [0], [1], [0, 0, 1, 1], [], []>} : vector<16x4xbf16>, vector<4x288xbf16>, vector<16x288xf32> -> vector<16x288xf32>
    %14 = arith.addf %7, %13 : vector<16x288xf32>
    %c0_12 = arith.constant 0 : index
    %c0_13 = arith.constant 0 : index
    %c2 = arith.constant 2 : index
    %15 = vector.load %arg1[%c0_12, %c0_13, %c2] : memref<1x4x326xf32, #tpu.memory_space<vmem>>, vector<1x4x288xf32>
    %16 = vector.shape_cast %15 : vector<1x4x288xf32> to vector<4x288xf32>
    %17 = arith.truncf %16 : vector<4x288xf32> to vector<4x288xbf16>
    %c2_14 = arith.constant 2 : index
    %c0_15 = arith.constant 0 : index
    %c0_16 = arith.constant 0 : index
    %18 = vector.load %arg2[%c2_14, %c0_15, %c0_16] : memref<9x16x4xbf16, #tpu.memory_space<vmem>>, vector<1x16x4xbf16>
    %19 = vector.shape_cast %18 : vector<1x16x4xbf16> to vector<16x4xbf16>
    %cst_17 = arith.constant dense<0.000000e+00> : vector<16x288xf32>
    %20 = tpu.matmul %19, %17, %cst_17 {dimension_numbers = #tpu.dot_dimension_numbers<[1], [0], [0], [1], [0, 0, 1, 1], [], []>} : vector<16x4xbf16>, vector<4x288xbf16>, vector<16x288xf32> -> vector<16x288xf32>
    %21 = arith.addf %14, %20 : vector<16x288xf32>
    %c0_18 = arith.constant 0 : index
    %c0_19 = arith.constant 0 : index
    %c18 = arith.constant 18 : index
    %22 = vector.load %arg1[%c0_18, %c0_19, %c18] : memref<1x4x326xf32, #tpu.memory_space<vmem>>, vector<1x4x288xf32>
    %23 = vector.shape_cast %22 : vector<1x4x288xf32> to vector<4x288xf32>
    %24 = arith.truncf %23 : vector<4x288xf32> to vector<4x288xbf16>
    %c3 = arith.constant 3 : index
    %c0_20 = arith.constant 0 : index
    %c0_21 = arith.constant 0 : index
    %25 = vector.load %arg2[%c3, %c0_20, %c0_21] : memref<9x16x4xbf16, #tpu.memory_space<vmem>>, vector<1x16x4xbf16>
    %26 = vector.shape_cast %25 : vector<1x16x4xbf16> to vector<16x4xbf16>
    %cst_22 = arith.constant dense<0.000000e+00> : vector<16x288xf32>
    %27 = tpu.matmul %26, %24, %cst_22 {dimension_numbers = #tpu.dot_dimension_numbers<[1], [0], [0], [1], [0, 0, 1, 1], [], []>} : vector<16x4xbf16>, vector<4x288xbf16>, vector<16x288xf32> -> vector<16x288xf32>
    %28 = arith.addf %21, %27 : vector<16x288xf32>
    %c0_23 = arith.constant 0 : index
    %c0_24 = arith.constant 0 : index
    %c19 = arith.constant 19 : index
    %29 = vector.load %arg1[%c0_23, %c0_24, %c19] : memref<1x4x326xf32, #tpu.memory_space<vmem>>, vector<1x4x288xf32>
    %30 = vector.shape_cast %29 : vector<1x4x288xf32> to vector<4x288xf32>
    %31 = arith.truncf %30 : vector<4x288xf32> to vector<4x288xbf16>
    %c4 = arith.constant 4 : index
    %c0_25 = arith.constant 0 : index
    %c0_26 = arith.constant 0 : index
    %32 = vector.load %arg2[%c4, %c0_25, %c0_26] : memref<9x16x4xbf16, #tpu.memory_space<vmem>>, vector<1x16x4xbf16>
    %33 = vector.shape_cast %32 : vector<1x16x4xbf16> to vector<16x4xbf16>
    %cst_27 = arith.constant dense<0.000000e+00> : vector<16x288xf32>
    %34 = tpu.matmul %33, %31, %cst_27 {dimension_numbers = #tpu.dot_dimension_numbers<[1], [0], [0], [1], [0, 0, 1, 1], [], []>} : vector<16x4xbf16>, vector<4x288xbf16>, vector<16x288xf32> -> vector<16x288xf32>
    %35 = arith.addf %28, %34 : vector<16x288xf32>
    %c0_28 = arith.constant 0 : index
    %c0_29 = arith.constant 0 : index
    %c20 = arith.constant 20 : index
    %36 = vector.load %arg1[%c0_28, %c0_29, %c20] : memref<1x4x326xf32, #tpu.memory_space<vmem>>, vector<1x4x288xf32>
    %37 = vector.shape_cast %36 : vector<1x4x288xf32> to vector<4x288xf32>
    %38 = arith.truncf %37 : vector<4x288xf32> to vector<4x288xbf16>
    %c5 = arith.constant 5 : index
    %c0_30 = arith.constant 0 : index
    %c0_31 = arith.constant 0 : index
    %39 = vector.load %arg2[%c5, %c0_30, %c0_31] : memref<9x16x4xbf16, #tpu.memory_space<vmem>>, vector<1x16x4xbf16>
    %40 = vector.shape_cast %39 : vector<1x16x4xbf16> to vector<16x4xbf16>
    %cst_32 = arith.constant dense<0.000000e+00> : vector<16x288xf32>
    %41 = tpu.matmul %40, %38, %cst_32 {dimension_numbers = #tpu.dot_dimension_numbers<[1], [0], [0], [1], [0, 0, 1, 1], [], []>} : vector<16x4xbf16>, vector<4x288xbf16>, vector<16x288xf32> -> vector<16x288xf32>
    %42 = arith.addf %35, %41 : vector<16x288xf32>
    %c0_33 = arith.constant 0 : index
    %c0_34 = arith.constant 0 : index
    %c36 = arith.constant 36 : index
    %43 = vector.load %arg1[%c0_33, %c0_34, %c36] : memref<1x4x326xf32, #tpu.memory_space<vmem>>, vector<1x4x288xf32>
    %44 = vector.shape_cast %43 : vector<1x4x288xf32> to vector<4x288xf32>
    %45 = arith.truncf %44 : vector<4x288xf32> to vector<4x288xbf16>
    %c6 = arith.constant 6 : index
    %c0_35 = arith.constant 0 : index
    %c0_36 = arith.constant 0 : index
    %46 = vector.load %arg2[%c6, %c0_35, %c0_36] : memref<9x16x4xbf16, #tpu.memory_space<vmem>>, vector<1x16x4xbf16>
    %47 = vector.shape_cast %46 : vector<1x16x4xbf16> to vector<16x4xbf16>
    %cst_37 = arith.constant dense<0.000000e+00> : vector<16x288xf32>
    %48 = tpu.matmul %47, %45, %cst_37 {dimension_numbers = #tpu.dot_dimension_numbers<[1], [0], [0], [1], [0, 0, 1, 1], [], []>} : vector<16x4xbf16>, vector<4x288xbf16>, vector<16x288xf32> -> vector<16x288xf32>
    %49 = arith.addf %42, %48 : vector<16x288xf32>
    %c0_38 = arith.constant 0 : index
    %c0_39 = arith.constant 0 : index
    %c37 = arith.constant 37 : index
    %50 = vector.load %arg1[%c0_38, %c0_39, %c37] : memref<1x4x326xf32, #tpu.memory_space<vmem>>, vector<1x4x288xf32>
    %51 = vector.shape_cast %50 : vector<1x4x288xf32> to vector<4x288xf32>
    %52 = arith.truncf %51 : vector<4x288xf32> to vector<4x288xbf16>
    %c7 = arith.constant 7 : index
    %c0_40 = arith.constant 0 : index
    %c0_41 = arith.constant 0 : index
    %53 = vector.load %arg2[%c7, %c0_40, %c0_41] : memref<9x16x4xbf16, #tpu.memory_space<vmem>>, vector<1x16x4xbf16>
    %54 = vector.shape_cast %53 : vector<1x16x4xbf16> to vector<16x4xbf16>
    %cst_42 = arith.constant dense<0.000000e+00> : vector<16x288xf32>
    %55 = tpu.matmul %54, %52, %cst_42 {dimension_numbers = #tpu.dot_dimension_numbers<[1], [0], [0], [1], [0, 0, 1, 1], [], []>} : vector<16x4xbf16>, vector<4x288xbf16>, vector<16x288xf32> -> vector<16x288xf32>
    %56 = arith.addf %49, %55 : vector<16x288xf32>
    %c0_43 = arith.constant 0 : index
    %c0_44 = arith.constant 0 : index
    %c38 = arith.constant 38 : index
    %57 = vector.load %arg1[%c0_43, %c0_44, %c38] : memref<1x4x326xf32, #tpu.memory_space<vmem>>, vector<1x4x288xf32>
    %58 = vector.shape_cast %57 : vector<1x4x288xf32> to vector<4x288xf32>
    %59 = arith.truncf %58 : vector<4x288xf32> to vector<4x288xbf16>
    %c8 = arith.constant 8 : index
    %c0_45 = arith.constant 0 : index
    %c0_46 = arith.constant 0 : index
    %60 = vector.load %arg2[%c8, %c0_45, %c0_46] : memref<9x16x4xbf16, #tpu.memory_space<vmem>>, vector<1x16x4xbf16>
    %61 = vector.shape_cast %60 : vector<1x16x4xbf16> to vector<16x4xbf16>
    %cst_47 = arith.constant dense<0.000000e+00> : vector<16x288xf32>
    %62 = tpu.matmul %61, %59, %cst_47 {dimension_numbers = #tpu.dot_dimension_numbers<[1], [0], [0], [1], [0, 0, 1, 1], [], []>} : vector<16x4xbf16>, vector<4x288xbf16>, vector<16x288xf32> -> vector<16x288xf32>
    %63 = arith.addf %56, %62 : vector<16x288xf32>
    %c0_48 = arith.constant 0 : index
    %c0_49 = arith.constant 0 : index
    %64 = vector.load %arg3[%c0_48, %c0_49] : memref<16x1xf32, #tpu.memory_space<vmem>>, vector<16x1xf32>
    %65 = vector.broadcast %64 : vector<16x1xf32> to vector<16x288xf32>
    %66 = arith.addf %63, %65 : vector<16x288xf32>
    %67 = arith.negf %66 : vector<16x288xf32>
    %68 = math.exp %67 : vector<16x288xf32>
    %cst_50 = arith.constant 1.000000e+00 : f32
    %69 = vector.broadcast %cst_50 : f32 to vector<16x288xf32>
    %70 = arith.addf %69, %68 : vector<16x288xf32>
    %71 = arith.divf %69, %70 : vector<16x288xf32>
    %72 = arith.mulf %66, %71 : vector<16x288xf32>
    %cst_51 = arith.constant 0.000000e+00 : f32
    %73 = vector.broadcast %cst_51 : f32 to vector<16x19xf32>
    %c0_52 = arith.constant 0 : index
    %c0_53 = arith.constant 0 : index
    %74 = vector.load %arg16[%c0_52, %c0_53] : memref<16x326xf32, #tpu.memory_space<vmem>>, vector<16x19xf32>
    tpu.vector_store %arg16[%c0_52, %c0_53], %73 {strides = array<i32>} : memref<16x326xf32, #tpu.memory_space<vmem>>, vector<16x19xf32>,
    %cst_54 = arith.constant 0.000000e+00 : f32
    %75 = vector.broadcast %cst_54 : f32 to vector<16x19xf32>
    %c0_55 = arith.constant 0 : index
    %c307 = arith.constant 307 : index
    %76 = vector.load %arg16[%c0_55, %c307] : memref<16x326xf32, #tpu.memory_space<vmem>>, vector<16x19xf32>
    tpu.vector_store %arg16[%c0_55, %c307], %75 {strides = array<i32>} : memref<16x326xf32, #tpu.memory_space<vmem>>, vector<16x19xf32>,
    %c0_56 = arith.constant 0 : index
    %c0_57 = arith.constant 0 : index
    %77 = vector.load %arg4[%c0_56, %c0_57] : memref<1x288xf32, #tpu.memory_space<vmem>>, vector<1x288xf32>
    %78 = vector.broadcast %77 : vector<1x288xf32> to vector<16x288xf32>
    %79 = arith.mulf %72, %78 : vector<16x288xf32>
    %c0_58 = arith.constant 0 : index
    %c19_59 = arith.constant 19 : index
    %80 = vector.load %arg16[%c0_58, %c19_59] : memref<16x326xf32, #tpu.memory_space<vmem>>, vector<16x288xf32>
    tpu.vector_store %arg16[%c0_58, %c19_59], %79 {strides = array<i32>} : memref<16x326xf32, #tpu.memory_space<vmem>>, vector<16x288xf32>,
    %cst_60 = arith.constant 0.000000e+00 : f32
    %81 = vector.broadcast %cst_60 : f32 to vector<16x288xf32>
    %c0_61 = arith.constant 0 : index
    %c0_62 = arith.constant 0 : index
    %82 = vector.load %arg16[%c0_61, %c0_62] : memref<16x326xf32, #tpu.memory_space<vmem>>, vector<16x288xf32>
    %c0_63 = arith.constant 0 : index
    %c0_64 = arith.constant 0 : index
    %83 = vector.load %arg5[%c0_63, %c0_64] : memref<16x9xf32, #tpu.memory_space<vmem>>, vector<16x1xf32>
    %84 = vector.broadcast %83 : vector<16x1xf32> to vector<16x288xf32>
    %85 = arith.mulf %82, %84 : vector<16x288xf32>
    %86 = arith.addf %81, %85 : vector<16x288xf32>
    %c0_65 = arith.constant 0 : index
    %c1_66 = arith.constant 1 : index
    %87 = vector.load %arg16[%c0_65, %c1_66] : memref<16x326xf32, #tpu.memory_space<vmem>>, vector<16x288xf32>
    %c0_67 = arith.constant 0 : index
    %c1_68 = arith.constant 1 : index
    %88 = vector.load %arg5[%c0_67, %c1_68] : memref<16x9xf32, #tpu.memory_space<vmem>>, vector<16x1xf32>
    %89 = vector.broadcast %88 : vector<16x1xf32> to vector<16x288xf32>
    %90 = arith.mulf %87, %89 : vector<16x288xf32>
    %91 = arith.addf %86, %90 : vector<16x288xf32>
    %c0_69 = arith.constant 0 : index
    %c2_70 = arith.constant 2 : index
    %92 = vector.load %arg16[%c0_69, %c2_70] : memref<16x326xf32, #tpu.memory_space<vmem>>, vector<16x288xf32>
    %c0_71 = arith.constant 0 : index
    %c2_72 = arith.constant 2 : index
    %93 = vector.load %arg5[%c0_71, %c2_72] : memref<16x9xf32, #tpu.memory_space<vmem>>, vector<16x1xf32>
    %94 = vector.broadcast %93 : vector<16x1xf32> to vector<16x288xf32>
    %95 = arith.mulf %92, %94 : vector<16x288xf32>
    %96 = arith.addf %91, %95 : vector<16x288xf32>
    %c0_73 = arith.constant 0 : index
    %c18_74 = arith.constant 18 : index
    %97 = vector.load %arg16[%c0_73, %c18_74] : memref<16x326xf32, #tpu.memory_space<vmem>>, vector<16x288xf32>
    %c0_75 = arith.constant 0 : index
    %c3_76 = arith.constant 3 : index
    %98 = vector.load %arg5[%c0_75, %c3_76] : memref<16x9xf32, #tpu.memory_space<vmem>>, vector<16x1xf32>
    %99 = vector.broadcast %98 : vector<16x1xf32> to vector<16x288xf32>
    %100 = arith.mulf %97, %99 : vector<16x288xf32>
    %101 = arith.addf %96, %100 : vector<16x288xf32>
    %c0_77 = arith.constant 0 : index
    %c19_78 = arith.constant 19 : index
    %102 = vector.load %arg16[%c0_77, %c19_78] : memref<16x326xf32, #tpu.memory_space<vmem>>, vector<16x288xf32>
    %c0_79 = arith.constant 0 : index
    %c4_80 = arith.constant 4 : index
    %103 = vector.load %arg5[%c0_79, %c4_80] : memref<16x9xf32, #tpu.memory_space<vmem>>, vector<16x1xf32>
    %104 = vector.broadcast %103 : vector<16x1xf32> to vector<16x288xf32>
    %105 = arith.mulf %102, %104 : vector<16x288xf32>
    %106 = arith.addf %101, %105 : vector<16x288xf32>
    %c0_81 = arith.constant 0 : index
    %c20_82 = arith.constant 20 : index
    %107 = vector.load %arg16[%c0_81, %c20_82] : memref<16x326xf32, #tpu.memory_space<vmem>>, vector<16x288xf32>
    %c0_83 = arith.constant 0 : index
    %c5_84 = arith.constant 5 : index
    %108 = vector.load %arg5[%c0_83, %c5_84] : memref<16x9xf32, #tpu.memory_space<vmem>>, vector<16x1xf32>
    %109 = vector.broadcast %108 : vector<16x1xf32> to vector<16x288xf32>
    %110 = arith.mulf %107, %109 : vector<16x288xf32>
    %111 = arith.addf %106, %110 : vector<16x288xf32>
    %c0_85 = arith.constant 0 : index
    %c36_86 = arith.constant 36 : index
    %112 = vector.load %arg16[%c0_85, %c36_86] : memref<16x326xf32, #tpu.memory_space<vmem>>, vector<16x288xf32>
    %c0_87 = arith.constant 0 : index
    %c6_88 = arith.constant 6 : index
    %113 = vector.load %arg5[%c0_87, %c6_88] : memref<16x9xf32, #tpu.memory_space<vmem>>, vector<16x1xf32>
    %114 = vector.broadcast %113 : vector<16x1xf32> to vector<16x288xf32>
    %115 = arith.mulf %112, %114 : vector<16x288xf32>
    %116 = arith.addf %111, %115 : vector<16x288xf32>
    %c0_89 = arith.constant 0 : index
    %c37_90 = arith.constant 37 : index
    %117 = vector.load %arg16[%c0_89, %c37_90] : memref<16x326xf32, #tpu.memory_space<vmem>>, vector<16x288xf32>
    %c0_91 = arith.constant 0 : index
    %c7_92 = arith.constant 7 : index
    %118 = vector.load %arg5[%c0_91, %c7_92] : memref<16x9xf32, #tpu.memory_space<vmem>>, vector<16x1xf32>
    %119 = vector.broadcast %118 : vector<16x1xf32> to vector<16x288xf32>
    %120 = arith.mulf %117, %119 : vector<16x288xf32>
    %121 = arith.addf %116, %120 : vector<16x288xf32>
    %c0_93 = arith.constant 0 : index
    %c38_94 = arith.constant 38 : index
    %122 = vector.load %arg16[%c0_93, %c38_94] : memref<16x326xf32, #tpu.memory_space<vmem>>, vector<16x288xf32>
    %c0_95 = arith.constant 0 : index
    %c8_96 = arith.constant 8 : index
    %123 = vector.load %arg5[%c0_95, %c8_96] : memref<16x9xf32, #tpu.memory_space<vmem>>, vector<16x1xf32>
    %124 = vector.broadcast %123 : vector<16x1xf32> to vector<16x288xf32>
    %125 = arith.mulf %122, %124 : vector<16x288xf32>
    %126 = arith.addf %121, %125 : vector<16x288xf32>
    %c0_97 = arith.constant 0 : index
    %c0_98 = arith.constant 0 : index
    %127 = vector.load %arg6[%c0_97, %c0_98] : memref<16x1xf32, #tpu.memory_space<vmem>>, vector<16x1xf32>
    %128 = vector.broadcast %127 : vector<16x1xf32> to vector<16x288xf32>
    %129 = arith.addf %126, %128 : vector<16x288xf32>
    %130 = arith.negf %129 : vector<16x288xf32>
    %131 = math.exp %130 : vector<16x288xf32>
    %cst_99 = arith.constant 1.000000e+00 : f32
    %132 = vector.broadcast %cst_99 : f32 to vector<16x288xf32>
    %133 = arith.addf %132, %131 : vector<16x288xf32>
    %134 = arith.divf %132, %133 : vector<16x288xf32>
    %135 = arith.mulf %129, %134 : vector<16x288xf32>
    %c0_100 = arith.constant 0 : index
    %c0_101 = arith.constant 0 : index
    %136 = vector.load %arg7[%c0_100, %c0_101] : memref<1x288xf32, #tpu.memory_space<vmem>>, vector<1x288xf32>
    %137 = vector.broadcast %136 : vector<1x288xf32> to vector<16x288xf32>
    %138 = arith.mulf %135, %137 : vector<16x288xf32>
    %cst_102 = arith.constant dense<0.000000e+00> : vector<16xf32>
    %139 = vector.multi_reduction <add>, %138, %cst_102 [1] : vector<16x288xf32> to vector<16xf32>
    %140 = vector.shape_cast %139 : vector<16xf32> to vector<16x1xf32>
    %cst_103 = arith.constant 3.906250e-03 : f32
    %141 = vector.broadcast %cst_103 : f32 to vector<16x1xf32>
    %142 = arith.mulf %140, %141 : vector<16x1xf32>
    %c0_104 = arith.constant 0 : index
    %c0_105 = arith.constant 0 : index
    %143 = vector.load %arg8[%c0_104, %c0_105] : memref<16x1xf32, #tpu.memory_space<vmem>>, vector<16x1xf32>
    %144 = arith.mulf %142, %143 : vector<16x1xf32>
    %cst_106 = arith.constant dense<0.000000e+00> : vector<1xf32>
    %145 = vector.multi_reduction <add>, %144, %cst_106 [0] : vector<16x1xf32> to vector<1xf32>
    %146 = vector.shape_cast %145 : vector<1xf32> to vector<1x1xf32>
    %c0_107 = arith.constant 0 : index
    %c0_108 = arith.constant 0 : index
    %147 = vector.load %arg9[%c0_107, %c0_108] : memref<1x1xf32, #tpu.memory_space<vmem>>, vector<1x1xf32>
    %148 = arith.addf %146, %147 : vector<1x1xf32>
    %149 = arith.negf %148 : vector<1x1xf32>
    %150 = math.exp %149 : vector<1x1xf32>
    %cst_109 = arith.constant 1.000000e+00 : f32
    %151 = vector.broadcast %cst_109 : f32 to vector<1x1xf32>
    %152 = arith.addf %151, %150 : vector<1x1xf32>
    %153 = arith.divf %151, %152 : vector<1x1xf32>
    %154 = arith.mulf %148, %153 : vector<1x1xf32>
    %c0_110 = arith.constant 0 : index
    %c0_111 = arith.constant 0 : index
    %155 = vector.load %arg10[%c0_110, %c0_111] : memref<16x1xf32, #tpu.memory_space<vmem>>, vector<16x1xf32>
    %156 = vector.broadcast %154 : vector<1x1xf32> to vector<16x1xf32>
    %157 = arith.mulf %155, %156 : vector<16x1xf32>
    %cst_112 = arith.constant dense<0.000000e+00> : vector<16xf32>
    %158 = vector.multi_reduction <add>, %157, %cst_112 [1] : vector<16x1xf32> to vector<16xf32>
    %159 = vector.shape_cast %158 : vector<16xf32> to vector<16x1xf32>
    %c0_113 = arith.constant 0 : index
    %c0_114 = arith.constant 0 : index
    %160 = vector.load %arg11[%c0_113, %c0_114] : memref<16x1xf32, #tpu.memory_space<vmem>>, vector<16x1xf32>
    %161 = arith.addf %159, %160 : vector<16x1xf32>
    %162 = arith.negf %161 : vector<16x1xf32>
    %163 = math.exp %162 : vector<16x1xf32>
    %cst_115 = arith.constant 1.000000e+00 : f32
    %164 = vector.broadcast %cst_115 : f32 to vector<16x1xf32>
    %165 = arith.addf %164, %163 : vector<16x1xf32>
    %166 = arith.divf %164, %165 : vector<16x1xf32>
    %167 = vector.broadcast %166 : vector<16x1xf32> to vector<16x288xf32>
    %168 = arith.mulf %135, %167 : vector<16x288xf32>
    %169 = arith.truncf %168 : vector<16x288xf32> to vector<16x288xbf16>
    %c0_116 = arith.constant 0 : index
    %c0_117 = arith.constant 0 : index
    %170 = vector.load %arg12[%c0_116, %c0_117] : memref<4x16xbf16, #tpu.memory_space<vmem>>, vector<4x16xbf16>
    %cst_118 = arith.constant dense<0.000000e+00> : vector<4x288xf32>
    %171 = tpu.matmul %170, %169, %cst_118 {dimension_numbers = #tpu.dot_dimension_numbers<[1], [0], [0], [1], [0, 0, 1, 1], [], []>} : vector<4x16xbf16>, vector<16x288xbf16>, vector<4x288xf32> -> vector<4x288xf32>
    %c0_119 = arith.constant 0 : index
    %c0_120 = arith.constant 0 : index
    %172 = vector.load %arg13[%c0_119, %c0_120] : memref<4x1xf32, #tpu.memory_space<vmem>>, vector<4x1xf32>
    %173 = vector.broadcast %172 : vector<4x1xf32> to vector<4x288xf32>
    %174 = arith.addf %171, %173 : vector<4x288xf32>
    %c0_121 = arith.constant 0 : index
    %c0_122 = arith.constant 0 : index
    %c0_123 = arith.constant 0 : index
    %175 = vector.load %arg14[%c0_121, %c0_122, %c0_123] : memref<1x4x288xf32, #tpu.memory_space<vmem>>, vector<1x4x288xf32>
    %176 = vector.shape_cast %175 : vector<1x4x288xf32> to vector<4x288xf32>
    %177 = arith.addf %174, %176 : vector<4x288xf32>
    %c0_124 = arith.constant 0 : index
    %c0_125 = arith.constant 0 : index
    %c0_126 = arith.constant 0 : index
    %178 = vector.load %arg15[%c0_124, %c0_125, %c0_126] : memref<1x4x288xf32, #tpu.memory_space<vmem>>, vector<1x4x288xf32>
    %179 = vector.shape_cast %178 : vector<1x4x288xf32> to vector<4x288xf32>
    %180 = vector.shape_cast %177 : vector<4x288xf32> to vector<1x4x288xf32>
    tpu.vector_store %arg15[%c0_124, %c0_125, %c0_126], %180 {strides = array<i32>} : memref<1x4x288xf32, #tpu.memory_space<vmem>>, vector<1x4x288xf32>,
    return
  }
  func.func @transform_0(%arg0: i32) -> (i32, i32, i32) {
    %c0_i32 = arith.constant 0 : i32
    %c0_i32_0 = arith.constant 0 : i32
    %c0_i32_1 = arith.constant 0 : i32
    return %arg0, %c0_i32, %c0_i32_0 : i32, i32, i32
  }
  func.func @transform_1(%arg0: i32) -> (i32, i32, i32) {
    %c0_i32 = arith.constant 0 : i32
    %c0_i32_0 = arith.constant 0 : i32
    %c0_i32_1 = arith.constant 0 : i32
    %c0_i32_2 = arith.constant 0 : i32
    return %c0_i32, %c0_i32_0, %c0_i32_1 : i32, i32, i32
  }
  func.func @transform_2(%arg0: i32) -> (i32, i32) {
    %c0_i32 = arith.constant 0 : i32
    %c0_i32_0 = arith.constant 0 : i32
    %c0_i32_1 = arith.constant 0 : i32
    return %c0_i32, %c0_i32_0 : i32, i32
  }
  func.func @transform_3(%arg0: i32) -> (i32, i32) {
    %c0_i32 = arith.constant 0 : i32
    %c0_i32_0 = arith.constant 0 : i32
    %c0_i32_1 = arith.constant 0 : i32
    return %c0_i32, %c0_i32_0 : i32, i32
  }
  func.func @transform_4(%arg0: i32) -> (i32, i32) {
    %c0_i32 = arith.constant 0 : i32
    %c0_i32_0 = arith.constant 0 : i32
    %c0_i32_1 = arith.constant 0 : i32
    return %c0_i32, %c0_i32_0 : i32, i32
  }
  func.func @transform_5(%arg0: i32) -> (i32, i32) {
    %c0_i32 = arith.constant 0 : i32
    %c0_i32_0 = arith.constant 0 : i32
    %c0_i32_1 = arith.constant 0 : i32
    return %c0_i32, %c0_i32_0 : i32, i32
  }
  func.func @transform_6(%arg0: i32) -> (i32, i32) {
    %c0_i32 = arith.constant 0 : i32
    %c0_i32_0 = arith.constant 0 : i32
    %c0_i32_1 = arith.constant 0 : i32
    return %c0_i32, %c0_i32_0 : i32, i32
  }
  func.func @transform_7(%arg0: i32) -> (i32, i32) {
    %c0_i32 = arith.constant 0 : i32
    %c0_i32_0 = arith.constant 0 : i32
    %c0_i32_1 = arith.constant 0 : i32
    return %c0_i32, %c0_i32_0 : i32, i32
  }
  func.func @transform_8(%arg0: i32) -> (i32, i32) {
    %c0_i32 = arith.constant 0 : i32
    %c0_i32_0 = arith.constant 0 : i32
    %c0_i32_1 = arith.constant 0 : i32
    return %c0_i32, %c0_i32_0 : i32, i32
  }
  func.func @transform_9(%arg0: i32) -> (i32, i32) {
    %c0_i32 = arith.constant 0 : i32
    %c0_i32_0 = arith.constant 0 : i32
    %c0_i32_1 = arith.constant 0 : i32
    return %c0_i32, %c0_i32_0 : i32, i32
  }
  func.func @transform_10(%arg0: i32) -> (i32, i32) {
    %c0_i32 = arith.constant 0 : i32
    %c0_i32_0 = arith.constant 0 : i32
    %c0_i32_1 = arith.constant 0 : i32
    return %c0_i32, %c0_i32_0 : i32, i32
  }
  func.func @transform_11(%arg0: i32) -> (i32, i32) {
    %c0_i32 = arith.constant 0 : i32
    %c0_i32_0 = arith.constant 0 : i32
    %c0_i32_1 = arith.constant 0 : i32
    return %c0_i32, %c0_i32_0 : i32, i32
  }
  func.func @transform_12(%arg0: i32) -> (i32, i32) {
    %c0_i32 = arith.constant 0 : i32
    %c0_i32_0 = arith.constant 0 : i32
    %c0_i32_1 = arith.constant 0 : i32
    return %c0_i32, %c0_i32_0 : i32, i32
  }
  func.func @transform_13(%arg0: i32) -> (i32, i32, i32) {
    %c0_i32 = arith.constant 0 : i32
    %c0_i32_0 = arith.constant 0 : i32
    %c0_i32_1 = arith.constant 0 : i32
    return %arg0, %c0_i32, %c0_i32_0 : i32, i32, i32
  }
  func.func @transform_14(%arg0: i32) -> (i32, i32, i32) {
    %c0_i32 = arith.constant 0 : i32
    %c0_i32_0 = arith.constant 0 : i32
    %c0_i32_1 = arith.constant 0 : i32
    return %arg0, %c0_i32, %c0_i32_0 : i32, i32, i32
  }
}

</mosaic_0001>

<bundles_post_ra>
// kernel: tpu_custom_call.1
= control target key start
LH: loop header
LB: loop body
LE: loop exit
PB: predicated region body
PF: predicated region fallthrough
CT: control target
= control target key end

     0   :  { %s3655_s0 = inlined_call_operand.vmem [shape: f32[2,4,326], index: 0, kind: input, shape index: {}]   ;;  %s3656_s1 = inlined_call_operand.vmem [shape: bf16[9,16,4], index: 1, kind: input, shape index: {}]   ;;  %s3657_s2 = inlined_call_operand.vmem [shape: f32[16,1], index: 2, kind: input, shape index: {}]   ;;  %s3658_s3 = inlined_call_operand.vmem [shape: f32[1,288], index: 3, kind: input, shape index: {}]   ;;  %s3659_s4 = inlined_call_operand.vmem [shape: f32[16,9], index: 4, kind: input, shape index: {}]   ;;  %s3660_s5 = inlined_call_operand.vmem [shape: f32[16,1], index: 5, kind: input, shape index: {}]   ;;  %s3661_s6 = inlined_call_operand.vmem [shape: f32[1,288], index: 6, kind: input, shape index: {}]   ;;  %s3662_s7 = inlined_call_operand.vmem [shape: f32[16,1], index: 7, kind: input, shape index: {}]   ;;  %s3663_s8 = inlined_call_operand.<no memory space> [shape: f32[1,1], index: 8, kind: input, shape index: {}]   ;;  %s3664_s9 = inlined_call_operand.vmem [shape: f32[16,1], index: 9, kind: input, shape index: {}]   ;;  %s3665_s10 = inlined_call_operand.vmem [shape: f32[16,1], index: 10, kind: input, shape index: {}]   ;;  %s3666_s11 = inlined_call_operand.vmem [shape: bf16[4,16], index: 11, kind: input, shape index: {}]   ;;  %s3667_s12 = inlined_call_operand.vmem [shape: f32[4,1], index: 12, kind: input, shape index: {}]   ;;  %s3668_s13 = inlined_call_operand.vmem [shape: f32[2,4,288], index: 13, kind: input, shape index: {}]   ;;  %s3669_s14 = inlined_call_operand.hbm [shape: f32[2,4,288], index: 14, kind: output, shape index: {}]  }
   0x1   :  { %3680 = sst [smem:[#allocation7_spill]] %s3655_s0  ;;  %v19_v0 = vstv %s3663_s8 }
   0x2   :  { %3681 = sst [smem:[#allocation8_spill]] %s3656_s1  ;;  %20 = vst [vmem:[#allocation3] sm:$0x1] %v19_v0 }
   0x3   :  { %3682 = sst [smem:[#allocation9_spill]] %s3657_s2 }
   0x4   :  { %21 = vsyncpa [#allocation5], 0 }
   0x5   :  { %23 = vsyncpa [#allocation5 + $0x1], 0  ;;  %s2796_s15 = smov 0   ;;  %s2798_s16 = smov 0  }
   0x6   :  { %s2800_s17 = smov 0   ;;  %s2802_s18 = smov 0  }
   0x7 LB: > { %s2817_s8 = sadd.s32 4294967295, %s2697_s18   ;;  %s2378_s19 = sadd.s32 4294967294, %s2697_s18   ;;  %s2697_s18 = sphi %s2802_s18, %s3700_s18   ;;  %s2693_s17 = sphi %s2800_s17, %s3699_s17   ;;  %s2689_s16 = sphi %s2798_s16, %s3698_s16   ;;  %s2685_s15 = sphi %s2796_s15, %s3697_s15  }
   0x8   : > { %s2821_s20 = sadd.s32 1, %s2697_s18   ;;  %s340_s21 = sadd.s32 1, %s2693_s17 }
   0x9   : > { %s337_s22 = ssub.s32 %s2697_s18, %s2821_s20  ;;  %p350_p0 = scmp.ne.s32.totalorder %s2693_s17, %s2689_s16 }
   0xa   : > { %p338_p1 = scmp.eq.s32.totalorder %s337_s22, 0  ;;  %p351_p2 = scmp.eq.s32.totalorder %s2817_s8, 1 }
   0xb   : > { %p356_p3 = scmp.ne.s32.totalorder %s2689_s16, %s2685_s15  ;;  %p357_p4 = scmp.eq.s32.totalorder %s2378_s19, 1 }
   0xc   : > { %s2832_s23 = scalar_select %p338_p1, %s2693_s17, %s340_s21  }
   0xd   : > { %p2834_p5 = por %p351_p2, %p350_p0  ;;  %p2838_p6 = por %p357_p4, %p356_p3 }
   0xe   : > { %p2381_p7 = scmp.ge.s32.totalorder %s2697_s18, 1  ;;  %p427_p8 = scmp.lt.s32.totalorder %s2697_s18, 3 }
  0x10   : > { %p428_p9 = pnand %p2381_p7, %p427_p8 }
  0x11   : > { %p478_p10 = scmp.lt.s32.totalorder (!%p428_p9), %s2817_s8, 1  ;;  %s3685_s0 = sld [smem:[#allocation7_spill]] (!%p428_p9) }
  0x12   : > { %431 = sbr.rel (%p428_p9) target bundleno = 1277 (0x4fd), region = 76  ;;  %s3678_s19 = smov (!%p428_p9), 127  }
  0x13   : > { %s3674_s21 = smov (!%p428_p9), 126   ;;  %s3670_s22 = smov (!%p428_p9), 110  }
  0x14   : > { %s3672_s28 = smov (!%p428_p9), 109   ;;  %s3676_s29 = smov (!%p428_p9), 108  }
  0x15   : > { %s3686_s1 = sld [smem:[#allocation8_spill]] (!%p428_p9) }
  0x16   : > { %s3687_s2 = sld [smem:[#allocation9_spill]] (!%p428_p9) }
  0x17   : > { %s2846_s26 = scalar_select %p478_p10, %s2817_s8, 1  ;;  %vm547_vm0 = vcmask 1041408   ;;  %vm543_vm1 = vcmask 31744   ;;  %vm691_vm2 = vcmask 1031168   ;;  %vm540_vm3 = vcmask 1039360  }
  0x18   : > { %vm787_vm4 = vcmask 900096   ;;  %vm883_vm5 = vcmask 891904   ;;  %vm979_vm6 = vcmask 883712   ;;  %vm1075_vm7 = vcmask 752640  }
  0x19   : > { %s2494_s27 = smul.u32 12, %s2846_s26  ;;  %vm1171_vm8 = vcmask 744448   ;;  %vm1267_vm9 = vcmask 736256   ;;  %s3691_s26 = smov 126  }
  0x1b   : > { %s2854_s30 = scalar_lea.vmem %s3685_s0, %s2494_s27  ;;  %s2655_s0 = scalar_lea.hbm %s3669_s14, 24 }
  0x1c   : > { %v490_v1 = vld [vmem:[%s2854_s30 + $0x8] sm:$0xf]  ;;  %v2858_v2 = vld [vmem:[%s2854_s30] sm:$0xff] }
  0x1d   : > { %495 = vst [vmem:[#allocation1 + $0x10] ss:$2 sm:$0xff] %v490_v1  ;;  %v508_v3 = vld [vmem:[%s2854_s30 + $0x8] sm:$0xf] }
  0x1e   : > { %493 = vst [vmem:[#allocation1] ss:$2 sm:$0xff] %v2858_v2  ;;  %v659_v7 = vld [vmem:[%s2854_s30 + $0x8] sm:$0xf] }
  0x1f   : > { %v755_v13 = vld [vmem:[%s2854_s30 + $0x8] sm:$0xf] }
  0x20   : > { %v851_v20 = vld [vmem:[%s2854_s30 + $0x8] sm:$0xf] }
  0x21   : > { %v947_v27 = vld [vmem:[%s2854_s30 + $0x8] sm:$0xf] }
  0x22   : > { %v1043_v34 = vld [vmem:[%s2854_s30 + $0x8] sm:$0xf] }
  0x23   : > { %v1139_v41 = vld [vmem:[%s2854_s30 + $0x8] sm:$0xf] }
  0x24   : > { %v2862_v4 = vld.sshfl [vmem:[#allocation1 + $0x10] sm:$0xff pattern:$0x75316420]  ;;  %v1235_v48 = vld [vmem:[%s2854_s30 + $0x8] sm:$0xf]  ;;  %s2706_s30 = smov 90  }
  0x25   : > { %513 = vst [vmem:[#allocation1 + $0x10] ss:$2 sm:$0xff] %v508_v3  ;;  %v2864_v5 = vld.sshfl [vmem:[#allocation1] sm:$0xff pattern:$0x75316420] }
  0x26   : > { %v2866_v6 = vld.sshfl [vmem:[#allocation1 + $0x8] sm:$0xff pattern:$0x75316420]  ;;  %v502_v62 = vpack.c.bf16 %v2864_v5, %v2864_v5 }
  0x27   : > { %511 = vst [vmem:[#allocation1] ss:$2 sm:$0xff] %v2858_v2 }
  0x28   : > { %v608_v0 = vsel %vm547_vm0, %v502_v62, 0 }
  0x29   : > { %623 = vmatpush.bf16.msra.mxu3 %v608_v0 }
  0x2c   : > { %v516_v8 = vld.sshfl [vmem:[#allocation1 + $0x10] sm:$0xff pattern:$0x75316420] }
  0x2d   : > { %v522_v9 = vpack.c.bf16 %v516_v8, %v516_v8  ;;  %664 = vst [vmem:[#allocation1 + $0x10] ss:$2 sm:$0xff] %v659_v7 }
  0x2e   : > { %v515_v10 = vld.sshfl [vmem:[#allocation1 + $0x8] sm:$0xff pattern:$0x75316420]  ;;  %v514_v11 = vld.sshfl [vmem:[#allocation1] sm:$0xff pattern:$0x75316420] }
  0x2f   : > { %538 = vrot.lane.b32.xlu0 %v522_v9, %s3678_s19  ;;  %v521_v12 = vpack.c.bf16 %v515_v10, %v515_v10  ;;  %662 = vst [vmem:[#allocation1] ss:$2 sm:$0xff] %v2858_v2  ;;  %v520_v14 = vpack.c.bf16 %v514_v11, %v514_v11  ;;  %v504_v9 = vpack.c.bf16 %v2862_v4, %v2862_v4  ;;  %v2929_v10 = vld [vmem:[%s3686_s1 + $0x10] sm:$0xff] }
  0x31   : > { %536 = vrot.lane.b32.xlu1 %v521_v12, %s3678_s19 }
  0x34   : > { %v667_v15 = vld.sshfl [vmem:[#allocation1 + $0x10] sm:$0xff pattern:$0x75316420] }
  0x35   : > { %760 = vst [vmem:[#allocation1 + $0x10] ss:$2 sm:$0xff] %v755_v13  ;;  %v673_v25 = vpack.c.bf16 %v667_v15, %v667_v15  ;;  %v2485_v13 = vld [vmem:[%s3686_s1 + $0x8] sm:$0xff]  ;;  %v614_v15 = vsel %vm547_vm0, %v504_v9, 0 }
  0x36   : > { %v665_v16 = vld.sshfl [vmem:[#allocation1] sm:$0xff pattern:$0x75316420]  ;;  %v666_v17 = vld.sshfl [vmem:[#allocation1 + $0x8] sm:$0xff pattern:$0x75316420] }
  0x37   : > { %534 = vrot.lane.b32.xlu0 %v520_v14, %s3678_s19  ;;  %v671_v18 = vpack.c.bf16 %v665_v16, %v665_v16  ;;  %758 = vst [vmem:[#allocation1] ss:$2 sm:$0xff] %v2858_v2  ;;  %v672_v19 = vpack.c.bf16 %v666_v17, %v666_v17  ;;  %s2705_s19 = smov 91   ;;  %v503_v17 = vpack.c.bf16 %v2866_v6, %v2866_v6 }
  0x39   : > { %685 = vrot.lane.b32.xlu1 %v671_v18, %s3674_s21  ;;  %687 = vrot.lane.b32.xlu2 %v672_v19, %s3674_s21 }
  0x3c   : > { %v763_v21 = vld.sshfl [vmem:[#allocation1 + $0x10] sm:$0xff pattern:$0x75316420] }
  0x3d   : > { %v769_v22 = vpack.c.bf16 %v763_v21, %v763_v21  ;;  %856 = vst [vmem:[#allocation1 + $0x10] ss:$2 sm:$0xff] %v851_v20  ;;  %v611_v20 = vsel %vm547_vm0, %v503_v17, 0  ;;  %v2707_v17 = vmov 0  }
  0x3e   : > { %v761_v23 = vld.sshfl [vmem:[#allocation1] sm:$0xff pattern:$0x75316420]  ;;  %v762_v24 = vld.sshfl [vmem:[#allocation1 + $0x8] sm:$0xff pattern:$0x75316420]  ;;  %2554 = vset.pattern.permute.xlu0 %v2707_v17  ;;  %2555 = vset.pattern.permute.xlu1 %v2707_v17 }
  0x3f   : > { %v768_v26 = vpack.c.bf16 %v762_v24, %v762_v24  ;;  %854 = vst [vmem:[#allocation1] ss:$2 sm:$0xff] %v2858_v2  ;;  %v767_v32 = vpack.c.bf16 %v761_v23, %v761_v23 }
  0x41   : > { %785 = vrot.lane.b32.xlu1 %v769_v22, %s3670_s22  ;;  %783 = vrot.lane.b32.xlu0 %v768_v26, %s3670_s22 }
  0x42   : > { %689 = vrot.lane.b32.xlu2 %v673_v25, %s3674_s21  ;;  %s3693_s21 = smov 109  }
  0x44   : > { %v859_v28 = vld.sshfl [vmem:[#allocation1 + $0x10] sm:$0xff pattern:$0x75316420] }
  0x45   : > { %v865_v29 = vpack.c.bf16 %v859_v28, %v859_v28  ;;  %952 = vst [vmem:[#allocation1 + $0x10] ss:$2 sm:$0xff] %v947_v27 }
  0x46   : > { %v858_v30 = vld.sshfl [vmem:[#allocation1 + $0x8] sm:$0xff pattern:$0x75316420]  ;;  %v857_v31 = vld.sshfl [vmem:[#allocation1] sm:$0xff pattern:$0x75316420] }
  0x47   : > { %v863_v33 = vpack.c.bf16 %v857_v31, %v857_v31  ;;  %950 = vst [vmem:[#allocation1] ss:$2 sm:$0xff] %v2858_v2  ;;  %v864_v38 = vpack.c.bf16 %v858_v30, %v858_v30 }
  0x49   : > { %877 = vrot.lane.b32.xlu1 %v863_v33, %s3672_s28  ;;  %881 = vrot.lane.b32.xlu0 %v865_v29, %s3672_s28  ;;  %v2487_v33 = vld [vmem:[%s3686_s1 + $0x18] sm:$0xff] }
  0x4a   : > { %781 = vrot.lane.b32.xlu2 %v767_v32, %s3670_s22  ;;  %s2704_s22 = smov 92  }
  0x4c   : > { %v955_v35 = vld.sshfl [vmem:[#allocation1 + $0x10] sm:$0xff pattern:$0x75316420] }
  0x4d   : > { %1048 = vst [vmem:[#allocation1 + $0x10] ss:$2 sm:$0xff] %v1043_v34  ;;  %v961_v43 = vpack.c.bf16 %v955_v35, %v955_v35 }
  0x4e   : > { %v954_v36 = vld.sshfl [vmem:[#allocation1 + $0x8] sm:$0xff pattern:$0x75316420]  ;;  %v953_v37 = vld.sshfl [vmem:[#allocation1] sm:$0xff pattern:$0x75316420] }
  0x4f   : > { %v960_v39 = vpack.c.bf16 %v954_v36, %v954_v36  ;;  %v959_v40 = vpack.c.bf16 %v953_v37, %v953_v37  ;;  %1046 = vst [vmem:[#allocation1] ss:$2 sm:$0xff] %v2858_v2 }
  0x51   : > { %975 = vrot.lane.b32.xlu1 %v960_v39, %s3676_s29  ;;  %973 = vrot.lane.b32.xlu0 %v959_v40, %s3676_s29 }
  0x52   : > { %879 = vrot.lane.b32.xlu2 %v864_v38, %s3672_s28  ;;  %s2716_s28 = smov 19  }
  0x54   : > { %v1051_v42 = vld.sshfl [vmem:[#allocation1 + $0x10] sm:$0xff pattern:$0x75316420] }
  0x55   : > { %1144 = vst [vmem:[#allocation1 + $0x10] ss:$2 sm:$0xff] %v1139_v41  ;;  %v1057_v53 = vpack.c.bf16 %v1051_v42, %v1051_v42 }
  0x56   : > { %v1049_v44 = vld.sshfl [vmem:[#allocation1] sm:$0xff pattern:$0x75316420]  ;;  %v1050_v45 = vld.sshfl [vmem:[#allocation1 + $0x8] sm:$0xff pattern:$0x75316420] }
  0x57   : > { %v1056_v46 = vpack.c.bf16 %v1050_v45, %v1050_v45  ;;  %1142 = vst [vmem:[#allocation1] ss:$2 sm:$0xff] %v2858_v2  ;;  %v1055_v47 = vpack.c.bf16 %v1049_v44, %v1049_v44 }
  0x59   : > { %977 = vrot.lane.b32.xlu1 %v961_v43, %s3676_s29  ;;  %1071 = vrot.lane.b32.xlu0 %v1056_v46, %s2704_s22  ;;  %s487_s29 = scalar_lea.vmem %s3668_s13, %s2494_s27  ;;  %s3692_s27 = smov 110  }
  0x5a   : > { %1069 = vrot.lane.b32.xlu2 %v1055_v47, %s2704_s22  ;;  %v2266_v55 = vld [vmem:[%s487_s29 + $0x8] sm:$0xf]  ;;  %v2265_v61 = vld [vmem:[%s487_s29] sm:$0xff]  ;;  %s3690_s29 = smov 127  }
  0x5b   : > { %v2489_v47 = vld [vmem:[%s3686_s1 + $0x28] sm:$0xff] }
  0x5c   : > { %v1147_v49 = vld.sshfl [vmem:[#allocation1 + $0x10] sm:$0xff pattern:$0x75316420] }
  0x5d   : > { %v1153_v50 = vpack.c.bf16 %v1147_v49, %v1147_v49  ;;  %1240 = vst [vmem:[#allocation1 + $0x10] ss:$2 sm:$0xff] %v1235_v48 }
  0x5e   : > { %v1145_v51 = vld.sshfl [vmem:[#allocation1] sm:$0xff pattern:$0x75316420]  ;;  %v1146_v52 = vld.sshfl [vmem:[#allocation1 + $0x8] sm:$0xff pattern:$0x75316420] }
  0x5f   : > { %v1152_v54 = vpack.c.bf16 %v1146_v52, %v1146_v52  ;;  %1238 = vst [vmem:[#allocation1] ss:$2 sm:$0xff] %v2858_v2  ;;  %v1151_v59 = vpack.c.bf16 %v1145_v51, %v1145_v51  ;;  %v2918_v2 = vld [vmem:[%s3686_s1] sm:$0xff] }
  0x60   : > { %2397 = vmatmul.msk.bf16.vlgmr.msra.gmra.mxu3 %vm543_vm1, %v2918_v2 }
  0x61   : > { %1169 = vrot.lane.b32.xlu1 %v1153_v50, %s2705_s19  ;;  %1167 = vrot.lane.b32.xlu0 %v1152_v54, %s2705_s19 }
  0x62   : > { %1073 = vrot.lane.b32.xlu2 %v1057_v53, %s2704_s22 }
  0x64   : > { %v1243_v56 = vld.sshfl [vmem:[#allocation1 + $0x10] sm:$0xff pattern:$0x75316420] }
  0x65   : > { %v1249_v57 = vpack.c.bf16 %v1243_v56, %v1243_v56  ;;  %2271 = vst [vmem:[#allocation1 + $0x10] ss:$2 sm:$0xff] %v2266_v55 }
  0x66   : > { %v1241_v58 = vld.sshfl [vmem:[#allocation1] sm:$0xff pattern:$0x75316420]  ;;  %v1242_v63 = vld.sshfl [vmem:[#allocation1 + $0x8] sm:$0xff pattern:$0x75316420] }
  0x67   : > { %v1247_v60 = vpack.c.bf16 %v1241_v58, %v1241_v58  ;;  %v1248_v1 = vpack.c.bf16 %v1242_v63, %v1242_v63  ;;  %2269 = vst [vmem:[#allocation1] ss:$2 sm:$0xff] %v2265_v61 }
  0x69   : > { %1261 = vrot.lane.b32.xlu1 %v1247_v60, %s2706_s30  ;;  %1265 = vrot.lane.b32.xlu0 %v1249_v57, %s2706_s30 }
  0x6a   : > { %1165 = vrot.lane.b32.xlu2 %v1151_v59, %s2705_s19  ;;  %v2488_v59 = vld [vmem:[%s3686_s1 + $0x20] sm:$0xff] }
  0x72   : > { %1263 = vrot.lane.b32.xlu2 %v1248_v1, %s2706_s30 }
  0x93   : > { %v688_v3 = vpop.permute.xlu2 %687 }
  0x9c   : > { %v690_v5 = vpop.permute.xlu2 %689 }
  0x9d   : > { %v693_v7 = vsel %vm691_vm2, %v688_v3, %v690_v5  ;;  %v704_v24 = vsel %vm547_vm0, %v690_v5, 0 }
  0x9e   : > { %v701_v8 = vsel %vm547_vm0, %v693_v7, 0 }
  0x9f   : > { %727 = vmatpush.bf16.msrb.mxu3 %v701_v8 }
  0xa1   : > { %v539_v11 = vpop.permute.xlu0 %538 }
  0xa2   : > { %v555_v12 = vsel %vm547_vm0, %v539_v11, 0  ;;  %2407 = vmatmul.msk.bf16.vlgmr.msrb.gmra.mxu3 %vm543_vm1, %v2929_v10 }
  0xa3   : > { %v537_v14 = vpop.permute.xlu1 %536  ;;  %592 = vmatpush.bf16.msra.mxu2 %v555_v12 }
  0xa4   : > { %v542_v4 = vsel %vm540_vm3, %v537_v14, %v539_v11  ;;  %v782_v6 = vpop.permute.xlu2 %781  ;;  %v2491_v11 = vld [vmem:[%s3686_s1 + $0x38] sm:$0xff] }
  0xa5   : > { %v552_v16 = vsel %vm547_vm0, %v542_v4, 0 }
  0xa6   : > { %578 = vmatpush.bf16.msra.mxu1 %v552_v16  ;;  %2392 = vmatmul.msk.bf16.vlgmr.msra.gmra.mxu2 %vm543_vm1, %v2485_v13  ;;  %v1331_v16 = vld [vmem:[%s3687_s2 + $0x8] sm:$0xff] }
  0xa7   : > { %1339 = vperm.xlu1 %2555, %v1331_v16  }
  0xa9   : > { %2391 = vmatmul.msk.bf16.vlgmr.msra.gmra.mxu1 %vm543_vm1, %v2485_v13  ;;  %v535_v18 = vpop.permute.xlu0 %534 }
  0xaa   : > { %651 = vmatpush.bf16.msrb.mxu1 %v614_v15  ;;  %v541_v19 = vsel %vm540_vm3, %v535_v18, %v537_v14  ;;  %v1330_v15 = vld [vmem:[%s3687_s2] sm:$0xff] }
  0xab   : > { %v549_v21 = vsel %vm547_vm0, %v541_v19, 0  ;;  %v686_v22 = vpop.permute.xlu1 %685  ;;  %1334 = vperm.xlu0 %2554, %v1330_v15   ;;  %v2492_v18 = vld [vmem:[%s3686_s1 + $0x40] sm:$0xff] }
  0xac   : > { %564 = vmatpush.bf16.msra.mxu0 %v549_v21  ;;  %v692_v23 = vsel %vm691_vm2, %v686_v22, %v688_v3  ;;  %v880_v34 = vpop.permute.xlu2 %879 }
  0xad   : > { %v698_v25 = vsel %vm547_vm0, %v692_v23, 0 }
  0xae   : > { %713 = vmatpush.bf16.msrb.mxu2 %v698_v25 }
  0xaf   : > { %2390 = vmatmul.msk.bf16.vlgmr.msra.gmra.mxu0 %vm543_vm1, %v2485_v13 }
  0xb0   : > { %637 = vmatpush.bf16.msrb.mxu0 %v611_v20 }
  0xb3   : > { %v786_v26 = vpop.permute.xlu1 %785  ;;  %v784_v27 = vpop.permute.xlu0 %783 }
  0xb4   : > { %741 = vmatpush.bf16.msra.mxu0 %v704_v24  ;;  %v800_v28 = vsel %vm547_vm0, %v786_v26, 0  ;;  %v789_v29 = vsel %vm787_vm4, %v784_v27, %v786_v26  ;;  %v788_v30 = vsel %vm787_vm4, %v782_v6, %v784_v27  ;;  %v1070_v42 = vpop.permute.xlu2 %1069 }
  0xb5   : > { %v797_v31 = vsel %vm547_vm0, %v789_v29, 0  ;;  %v794_v32 = vsel %vm547_vm0, %v788_v30, 0  ;;  %837 = vmatpush.bf16.msra.mxu3 %v800_v28 }
  0xb6   : > { %2406 = vmatmul.msk.bf16.vlgmr.msrb.gmra.mxu2 %vm543_vm1, %v2929_v10  ;;  %809 = vmatpush.bf16.msra.mxu1 %v794_v32 }
  0xb7   : > { %823 = vmatpush.bf16.msra.mxu2 %v797_v31 }
  0xb8   : > { %2417 = vmatmul.msk.bf16.vlgmr.msra.gmra.mxu3 %vm543_vm1, %v2487_v33 }
  0xb9   : > { %2399 = vmatmul.msk.bf16.vlgmr.msrb.gmra.mxu1 %vm543_vm1, %v2918_v2 }
  0xbb   : > { %v878_v35 = vpop.permute.xlu1 %877  ;;  %v882_v36 = vpop.permute.xlu0 %881 }
  0xbc   : > { %v896_v37 = vsel %vm547_vm0, %v882_v36, 0  ;;  %v884_v38 = vsel %vm883_vm5, %v878_v35, %v880_v34  ;;  %v885_v39 = vsel %vm883_vm5, %v880_v34, %v882_v36  ;;  %v1074_v48 = vpop.permute.xlu2 %1073 }
  0xbd   : > { %v890_v40 = vsel %vm547_vm0, %v884_v38, 0  ;;  %v893_v41 = vsel %vm547_vm0, %v885_v39, 0  ;;  %933 = vmatpush.bf16.msrb.mxu2 %v896_v37  ;;  %v1088_v5 = vsel %vm547_vm0, %v1074_v48, 0 }
  0xbe   : > { %919 = vmatpush.bf16.msrb.mxu1 %v893_v41  ;;  %v3062_v41 = vld [vmem:[%s3659_s4 + $0x8] sm:$0xff] }
  0xbf   : > { %2398 = vmatmul.msk.bf16.vlgmr.msrb.gmra.mxu0 %vm543_vm1, %v2918_v2  ;;  %v2490_v2 = vld [vmem:[%s3686_s1 + $0x30] sm:$0xff] }
  0xc0   : > { %905 = vmatpush.bf16.msrb.mxu0 %v890_v40 }
  0xc3   : > { %v976_v43 = vpop.permute.xlu1 %975  ;;  %v974_v44 = vpop.permute.xlu0 %973 }
  0xc4   : > { %v980_v45 = vsel %vm979_vm6, %v974_v44, %v976_v43  ;;  %v1166_v58 = vpop.permute.xlu2 %1165 }
  0xc5   : > { %v986_v46 = vsel %vm547_vm0, %v980_v45, 0 }
  0xc6   : > { %2416 = vmatmul.msk.bf16.vlgmr.msra.gmra.mxu2 %vm543_vm1, %v2487_v33  ;;  %1001 = vmatpush.bf16.msrb.mxu3 %v986_v46 }
  0xc9   : > { %2415 = vmatmul.msk.bf16.vlgmr.msra.gmra.mxu1 %vm543_vm1, %v2487_v33  ;;  %2433 = vmatmul.msk.bf16.vlgmr.msrb.gmra.mxu3 %vm543_vm1, %v2489_v47 }
  0xcb   : > { %v978_v49 = vpop.permute.xlu1 %977  ;;  %v1072_v50 = vpop.permute.xlu0 %1071 }
  0xcc   : > { %v981_v51 = vsel %vm979_vm6, %v976_v43, %v978_v49  ;;  %v992_v52 = vsel %vm547_vm0, %v978_v49, 0  ;;  %v1076_v53 = vsel %vm1075_vm7, %v1070_v42, %v1072_v50  ;;  %v1077_v54 = vsel %vm1075_vm7, %v1072_v50, %v1074_v48  ;;  %v1264_v8 = vpop.permute.xlu2 %1263 }
  0xcd   : > { %v989_v55 = vsel %vm547_vm0, %v981_v51, 0  ;;  %v1082_v56 = vsel %vm547_vm0, %v1076_v53, 0  ;;  %1029 = vmatpush.bf16.msra.mxu1 %v992_v52  ;;  %v1085_v57 = vsel %vm547_vm0, %v1077_v54, 0  ;;  %v2708_v42 = vmov 1  }
  0xce   : > { %1097 = vmatpush.bf16.msra.mxu2 %v1082_v56  ;;  %1111 = vmatpush.bf16.msra.mxu3 %v1085_v57  ;;  %v2709_v48 = vmov 2   ;;  %v2710_v53 = vmov 3  }
  0xcf   : > { %2408 = vmatmul.msk.bf16.vlgmr.msra.gmra.mxu0 %vm543_vm1, %v2929_v10  ;;  %2557 = vset.pattern.permute.xlu1 %v2708_v42 }
  0xd0   : > { %1015 = vmatpush.bf16.msra.mxu0 %v989_v55  ;;  %2556 = vset.pattern.permute.xlu0 %v2708_v42  ;;  %v2711_v55 = vmov 4  }
  0xd1   : > { %1559 = vperm.xlu1 %2557, %v3062_v41   ;;  %2558 = vset.pattern.permute.xlu2 %v2709_v48 }
  0xd3   : > { %v1170_v60 = vpop.permute.xlu1 %1169  ;;  %v1168_v61 = vpop.permute.xlu0 %1167 }
  0xd4   : > { %v1184_v62 = vsel %vm547_vm0, %v1170_v60, 0  ;;  %v1173_v63 = vsel %vm1171_vm8, %v1168_v61, %v1170_v60  ;;  %v1172_v0 = vsel %vm1171_vm8, %v1166_v58, %v1168_v61  ;;  %v2712_v61 = vmov 5  }
  0xd5   : > { %v1181_v1 = vsel %vm547_vm0, %v1173_v63, 0  ;;  %1221 = vmatpush.bf16.msrb.mxu3 %v1184_v62  ;;  %v1178_v3 = vsel %vm547_vm0, %v1172_v0, 0 }
  0xd6   : > { %2426 = vmatmul.msk.bf16.vlgmr.msrb.gmra.mxu2 %vm543_vm1, %v2488_v59 }
  0xd7   : > { %1207 = vmatpush.bf16.msrb.mxu2 %v1181_v1 }
  0xd9   : > { %2425 = vmatmul.msk.bf16.vlgmr.msrb.gmra.mxu1 %vm543_vm1, %v2488_v59  ;;  %2443 = vmatmul.msk.bf16.vlgmr.msra.gmra.mxu3 %vm543_vm1, %v2490_v2 }
  0xda   : > { %1193 = vmatpush.bf16.msrb.mxu1 %v1178_v3  ;;  %2559 = vset.pattern.permute.xlu1 %v2709_v48 }
  0xdb   : > { %v1266_v7 = vpop.permute.xlu0 %1265  ;;  %v1262_v12 = vpop.permute.xlu1 %1261  ;;  %1608 = vperm.xlu1 %2559, %v3062_v41  }
  0xdc   : > { %v1269_v9 = vsel %vm1267_vm9, %v1264_v8, %v1266_v7  ;;  %v1280_v10 = vsel %vm547_vm0, %v1266_v7, 0  ;;  %v1268_v14 = vsel %vm1267_vm9, %v1262_v12, %v1264_v8 }
  0xdd   : > { %v1277_v13 = vsel %vm547_vm0, %v1269_v9, 0  ;;  %v1274_v4 = vsel %vm547_vm0, %v1268_v14, 0  ;;  %v2714_v14 = vmov 7  }
  0xdf   : > { %2424 = vmatmul.msk.bf16.vlgmr.msrb.gmra.mxu0 %vm543_vm1, %v2488_v59 }
  0xe0   : > { %1125 = vmatpush.bf16.msrb.mxu0 %v1088_v5 }
  0xe3   : > { %v3033_v19 = vpop.f32.mrf.mxu3  ;;  %2562 = vset.pattern.permute.xlu1 %v2711_v55 }
  0xe6   : > { %2442 = vmatmul.msk.bf16.vlgmr.msra.gmra.mxu2 %vm543_vm1, %v2490_v2 }
  0xe7   : > { %1317 = vmatpush.bf16.msra.mxu2 %v1280_v10 }
  0xe9   : > { %2435 = vmatmul.msk.bf16.vlgmr.msra.gmra.mxu1 %vm543_vm1, %v2489_v47  ;;  %2453 = vmatmul.msk.bf16.vlgmr.msrb.gmra.mxu3 %vm543_vm1, %v2491_v11 }
  0xea   : > { %1303 = vmatpush.bf16.msra.mxu1 %v1277_v13 }
  0xeb   : > { %v627_v22 = vpop.f32.mrf.mxu3 }
  0xef   : > { %2434 = vmatmul.msk.bf16.vlgmr.msra.gmra.mxu0 %vm543_vm1, %v2489_v47  ;;  %v3074_v47 = vld [vmem:[%s3659_s4] sm:$0xff] }
  0xf0   : > { %1289 = vmatpush.bf16.msra.mxu0 %v1274_v4  ;;  %1555 = vperm.xlu0 %2556, %v3074_v47  }
  0xf1   : > { %1604 = vperm.xlu2 %2558, %v3074_v47   ;;  %1702 = vperm.xlu1 %2562, %v3074_v47  }
  0xf6   : > { %2452 = vmatmul.msk.bf16.vlgmr.msrb.gmra.mxu2 %vm543_vm1, %v2491_v11 }
  0xf8   : > { %2561 = vset.pattern.permute.xlu0 %v2710_v53 }
  0xf9   : > { %2451 = vmatmul.msk.bf16.vlgmr.msrb.gmra.mxu1 %vm543_vm1, %v2491_v11  ;;  %2560 = vset.pattern.permute.xlu2 %v2710_v53 }
  0xfa   : > { %1657 = vperm.xlu0 %2561, %v3062_v41   ;;  %1653 = vperm.xlu2 %2560, %v3074_v47  }
  0xfb   : > { %2564 = vset.pattern.permute.xlu1 %v2712_v61 }
  0xfc   : > { %1751 = vperm.xlu1 %2564, %v3074_v47  }
  0xff   : > { %2444 = vmatmul.msk.bf16.vlgmr.msrb.gmra.mxu0 %vm543_vm1, %v2490_v2  ;;  %v2713_v2 = vmov 6  }
 0x102   : > { %2563 = vset.pattern.permute.xlu2 %v2711_v55  ;;  %2566 = vset.pattern.permute.xlu0 %v2713_v2 }
 0x103   : > { %1706 = vperm.xlu2 %2563, %v3062_v41   ;;  %1800 = vperm.xlu0 %2566, %v3074_v47  }
 0x104   : > { %2567 = vset.pattern.permute.xlu1 %v2713_v2 }
 0x105   : > { %1804 = vperm.xlu1 %2567, %v3062_v41  }
 0x106   : > { %2462 = vmatmul.msk.bf16.vlgmr.msra.gmra.mxu2 %vm543_vm1, %v2492_v18 }
 0x109   : > { %2461 = vmatmul.msk.bf16.vlgmr.msra.gmra.mxu1 %vm543_vm1, %v2492_v18 }
 0x10b   : > { %2565 = vset.pattern.permute.xlu2 %v2712_v61 }
 0x10c   : > { %1755 = vperm.xlu2 %2565, %v3062_v41  }
 0x10d   : > { %2569 = vset.pattern.permute.xlu1 %v2714_v14 }
 0x10e   : > { %1853 = vperm.xlu1 %2569, %v3062_v41  }
 0x10f   : > { %2460 = vmatmul.msk.bf16.vlgmr.msra.gmra.mxu0 %vm543_vm1, %v2492_v18 }
 0x114   : > { %2568 = vset.pattern.permute.xlu2 %v2714_v14 }
 0x115   : > { %1849 = vperm.xlu2 %2568, %v3074_v47  }
 0x116   : > { %2572 = vset.pattern.permute.xlu1 %v2707_v17 }
 0x117   : > { %1534 = vperm.xlu1 %2572, %v3074_v47  }
 0x119   : > { %v1340_v2 = vpop.permute.xlu1 %1339 }
 0x125   : > { %v3041_v6 = vpop.f32.mrf.mxu3 }
 0x126   : > { %v3035_v20 = vpop.f32.mrf.mxu1 }
 0x129   : > { %v594_v21 = vpop.f32.mrf.mxu2 }
 0x12c   : > { %v3037_v23 = vpop.f32.mrf.mxu0 }
 0x12d   : > { %v3047_v32 = vpop.f32.mrf.mxu3  ;;  %v626_v15 = vadd.f32 %v3033_v19, %v3037_v23 }
 0x12e   : > { %v3039_v24 = vpop.f32.mrf.mxu1 }
 0x131   : > { %v596_v25 = vpop.f32.mrf.mxu2 }
 0x134   : > { %v568_v26 = vpop.f32.mrf.mxu0 }
 0x135   : > { %v628_v27 = vadd.f32 %v627_v22, %v568_v26 }
 0x136   : > { %v653_v28 = vpop.f32.mrf.mxu1 }
 0x137   : > { %v3043_v29 = vadd.f32 %v653_v28, %v594_v21 }
 0x139   : > { %v3045_v30 = vpop.f32.mrf.mxu2 }
 0x13a   : > { %v748_v22 = vadd.f32 %v3045_v30, %v626_v15 }
 0x13b   : > { %v3057_v39 = vpop.f32.mrf.mxu3 }
 0x13c   : > { %v639_v31 = vpop.f32.mrf.mxu0 }
 0x13d   : > { %v640_v7 = vadd.f32 %v639_v31, %v3035_v20 }
 0x13e   : > { %v655_v33 = vpop.f32.mrf.mxu1 }
 0x13f   : > { %v3049_v34 = vadd.f32 %v655_v33, %v596_v25  ;;  %v749_v9 = vadd.f32 %v3041_v6, %v640_v7 }
 0x141   : > { %v717_v35 = vpop.f32.mrf.mxu2 }
 0x142   : > { %v3051_v36 = vadd.f32 %v717_v35, %v628_v27 }
 0x143   : > { %v3069_v46 = vpop.f32.mrf.mxu3 }
 0x144   : > { %v3053_v37 = vpop.f32.mrf.mxu0 }
 0x145   : > { %v642_v16 = vadd.f32 %v3053_v37, %v3039_v24 }
 0x146   : > { %v3055_v38 = vpop.f32.mrf.mxu1 }
 0x147   : > { %v844_v26 = vadd.f32 %v3055_v38, %v748_v22  ;;  %v752_v27 = vadd.f32 %v3047_v32, %v642_v16 }
 0x149   : > { %v825_v40 = vpop.f32.mrf.mxu2 }
 0x14a   : > { %v845_v13 = vadd.f32 %v825_v40, %v749_v9  ;;  %v1335_v40 = vpop.permute.xlu0 %1334 }
 0x14c   : > { %v743_v43 = vpop.f32.mrf.mxu0  ;;  %v3081_v52 = vpop.f32.mrf.mxu3 }
 0x14d   : > { %v750_v12 = vadd.f32 %v743_v43, %v3043_v29 }
 0x14e   : > { %v3065_v44 = vpop.f32.mrf.mxu1 }
 0x14f   : > { %v846_v20 = vadd.f32 %v3057_v39, %v750_v12  ;;  %v2715_v39 = vmov 8  }
 0x150   : > { %2570 = vset.pattern.permute.xlu2 %v2715_v39  ;;  %2571 = vset.pattern.permute.xlu0 %v2715_v39 }
 0x151   : > { %v3067_v45 = vpop.f32.mrf.mxu2  ;;  %1898 = vperm.xlu2 %2570, %v3074_v47   ;;  %1902 = vperm.xlu0 %2571, %v3062_v41  }
 0x152   : > { %v848_v24 = vadd.f32 %v3067_v45, %v752_v27 }
 0x154   : > { %v3077_v49 = vpop.f32.mrf.mxu0  ;;  %v3090_v59 = vpop.f32.mrf.mxu3 }
 0x155   : > { %v753_v19 = vadd.f32 %v3077_v49, %v3049_v34 }
 0x156   : > { %v921_v50 = vpop.f32.mrf.mxu1 }
 0x157   : > { %v941_v18 = vadd.f32 %v921_v50, %v845_v13  ;;  %v849_v32 = vadd.f32 %v3069_v46, %v753_v19  ;;  %v847_v50 = vadd.f32 %v3065_v44, %v3051_v36 }
 0x159   : > { %v935_v51 = vpop.f32.mrf.mxu2  ;;  %2573 = vset.pattern.permute.xlu2 %v2707_v17  ;;  %2574 = vset.pattern.permute.xlu0 %v2707_v17 }
 0x15a   : > { %v942_v6 = vadd.f32 %v935_v51, %v846_v20  ;;  %1539 = vperm.xlu2 %2573, %v3062_v41  }
 0x15c   : > { %v907_v54 = vpop.f32.mrf.mxu0  ;;  %v1113_v1 = vpop.f32.mrf.mxu3 }
 0x15d   : > { %v940_v29 = vadd.f32 %v907_v54, %v844_v26 }
 0x15e   : > { %v923_v56 = vpop.f32.mrf.mxu1 }
 0x15f   : > { %v944_v30 = vadd.f32 %v923_v56, %v848_v24  ;;  %v1036_v42 = vadd.f32 %v3081_v52, %v940_v29  ;;  %v3171_v29 = vld [vmem:[%s3658_s3] sm:$0x7] }
 0x161   : > { %v3086_v57 = vpop.f32.mrf.mxu2 }
 0x162   : > { %v945_v48 = vadd.f32 %v3086_v57, %v849_v32 }
 0x164   : > { %v3088_v58 = vpop.f32.mrf.mxu0  ;;  %v1115_v10 = vpop.f32.mrf.mxu3 }
 0x165   : > { %v943_v52 = vadd.f32 %v3088_v58, %v847_v50 }
 0x166   : > { %v1031_v60 = vpop.f32.mrf.mxu1 }
 0x167   : > { %v1038_v23 = vadd.f32 %v1031_v60, %v942_v6  ;;  %v1039_v58 = vadd.f32 %v3090_v59, %v943_v52 }
 0x169   : > { %v3094_v62 = vpop.f32.mrf.mxu2 }
 0x16a   : > { %v1132_v51 = vadd.f32 %v3094_v62, %v1036_v42 }
 0x16c   : > { %v1017_v63 = vpop.f32.mrf.mxu0  ;;  %v1223_v33 = vpop.f32.mrf.mxu3 }
 0x16d   : > { %v1037_v25 = vadd.f32 %v1017_v63, %v941_v18 }
 0x16e   : > { %v3096_v0 = vpop.f32.mrf.mxu1 }
 0x16f   : > { %v1133_v31 = vadd.f32 %v1113_v1, %v1037_v25  ;;  %v1041_v53 = vadd.f32 %v3096_v0, %v945_v48 }
 0x171   : > { %v3099_v3 = vpop.f32.mrf.mxu2 }
 0x172   : > { %v1135_v9 = vadd.f32 %v3099_v3, %v1039_v58 }
 0x174   : > { %v1019_v5 = vpop.f32.mrf.mxu0  ;;  %v1225_v36 = vpop.f32.mrf.mxu3 }
 0x175   : > { %v1040_v43 = vadd.f32 %v1019_v5, %v944_v30 }
 0x176   : > { %v1195_v8 = vpop.f32.mrf.mxu1 }
 0x177   : > { %v1228_v55 = vadd.f32 %v1195_v8, %v1132_v51  ;;  %v1136_v56 = vadd.f32 %v1115_v10, %v1040_v43 }
 0x179   : > { %v1209_v11 = vpop.f32.mrf.mxu2 }
 0x17a   : > { %v1229_v38 = vadd.f32 %v1209_v11, %v1133_v31 }
 0x17c   : > { %v1127_v4 = vpop.f32.mrf.mxu0 }
 0x17d   : > { %v1134_v35 = vadd.f32 %v1127_v4, %v1038_v23 }
 0x17e   : > { %v3113_v21 = vpop.f32.mrf.mxu1 }
 0x17f   : > { %v1230_v49 = vadd.f32 %v1223_v33, %v1134_v35  ;;  %v1231_v41 = vadd.f32 %v3113_v21, %v1135_v9 }
 0x181   : > { %v1211_v28 = vpop.f32.mrf.mxu2 }
 0x182   : > { %v1232_v1 = vadd.f32 %v1211_v28, %v1136_v56 }
 0x184   : > { %v1129_v37 = vpop.f32.mrf.mxu0 }
 0x185   : > { %v1137_v61 = vadd.f32 %v1129_v37, %v1041_v53 }
 0x186   : > { %v1305_v34 = vpop.f32.mrf.mxu1 }
 0x187   : > { %v1325_v45 = vadd.f32 %v1305_v34, %v1229_v38  ;;  %v1233_v8 = vadd.f32 %v1225_v36, %v1137_v61  ;;  %v1477_v34 = vperm.slane %v3171_v29, 1 }
 0x189   : > { %v3131_v47 = vadd.f32 %v1335_v40, %v1325_v45  ;;  %v1319_v46 = vpop.f32.mrf.mxu2 }
 0x18a   : > { %v1326_v54 = vadd.f32 %v1319_v46, %v1230_v49  ;;  %v1476_v49 = vperm.slane %v3171_v29, 0 }
 0x18b   : > { %v2464_v60 = vmul.f32 -1.442695, %v3131_v47 }
 0x18c   : > { %v3136_v57 = vadd.f32 %v1335_v40, %v1326_v54  ;;  %v1291_v63 = vpop.f32.mrf.mxu0 }
 0x18d   : > { %2575 = vpow2.f32 %v2464_v60  ;;  %v1324_v44 = vadd.f32 %v1291_v63, %v1228_v55 }
 0x18e   : > { %v2465_v62 = vmul.f32 -1.442695, %v3136_v57  ;;  %v1307_v0 = vpop.f32.mrf.mxu1 }
 0x18f   : > { %v3142_v5 = vadd.f32 %v1335_v40, %v1324_v44  ;;  %v1328_v7 = vadd.f32 %v1307_v0, %v1232_v1 }
 0x190   : > { %2577 = vpow2.f32 %v2465_v62 }
 0x191   : > { %v2463_v10 = vmul.f32 -1.442695, %v3142_v5  ;;  %v3147_v11 = vadd.f32 %v1340_v2, %v1328_v7  ;;  %v1321_v12 = vpop.f32.mrf.mxu2 }
 0x192   : > { %v1329_v13 = vadd.f32 %v1321_v12, %v1233_v8 }
 0x193   : > { %v2576_v14 = vpop.eup %2575  ;;  %2579 = vpow2.f32 %v2463_v10  ;;  %v2467_v59 = vmul.f32 -1.442695, %v3147_v11 }
 0x194   : > { %v1367_v4 = vadd.f32 1.0, %v2576_v14  ;;  %v3151_v15 = vadd.f32 %v1340_v2, %v1329_v13  ;;  %v1293_v17 = vpop.f32.mrf.mxu0 }
 0x195   : > { %2581 = vpow2.f32 %v2467_v59  ;;  %v1327_v16 = vadd.f32 %v1293_v17, %v1231_v41 }
 0x196   : > { %v2578_v18 = vpop.eup %2577  ;;  %2583 = vrcp.f32 %v1367_v4  ;;  %v2468_v20 = vmul.f32 -1.442695, %v3151_v15  ;;  %v1396_v33 = vand.u32 2147483647, %v1367_v4  ;;  %v1398_v35 = vand.u32 2147483648, %v1367_v4 }
 0x197   : > { %v3153_v3 = vadd.f32 1.0, %v2578_v18  ;;  %v3156_v22 = vadd.f32 %v1340_v2, %v1327_v16  ;;  %vm1392_vm11 = vweird.f32 %v1367_v4 }
 0x198   : > { %vm1397_vm13 = vcmp.eq.f32.partialorder %v1396_v33, 8.507059e+37  ;;  %v1399_v45 = vor.u32 1.1754944e-38, %v1398_v35 }
 0x199   : > { %v2580_v25 = vpop.eup %2579  ;;  %2585 = vrcp.f32 %v3153_v3  ;;  %v2466_v6 = vmul.f32 -1.442695, %v3156_v22  ;;  %vm1407_vm14 = vweird.f32 %v3153_v3  ;;  %v1413_v55 = vand.u32 2147483648, %v3153_v3 }
 0x19a   : > { %v3159_v21 = vadd.f32 1.0, %v2580_v25  ;;  %2587 = vpow2.f32 %v2468_v20  ;;  %v1411_v8 = vand.u32 2147483647, %v3153_v3 }
 0x19b   : > { %v2582_v26 = vpop.eup %2581  ;;  %v1414_v18 = vor.u32 1.1754944e-38, %v1413_v55 }
 0x19c   : > { %v2584_v27 = vpop.eup %2583  ;;  %2589 = vrcp.f32 %v3159_v21  ;;  %v3163_v19 = vadd.f32 1.0, %v2582_v26  ;;  %v1383_v48 = vand.u32 2147483648, %v3159_v21  ;;  %v1381_v63 = vand.u32 2147483647, %v3159_v21 }
 0x19d   : > { %v1388_v28 = vmul.f32 %v2584_v27, %v1367_v4  ;;  %2591 = vpow2.f32 %v2466_v6  ;;  %vm1393_vm10 = vweird.f32 %v2584_v27  ;;  %vm1377_vm0 = vweird.f32 %v3159_v21 }
 0x19e   : > { %2593 = vrcp.f32 %v3163_v19  ;;  %vm1394_vm12 = vmor %vm1392_vm11, %vm1393_vm10  ;;  %v1384_v1 = vor.u32 1.1754944e-38, %v1383_v48  ;;  %v1443_v2 = vand.u32 2147483648, %v3163_v19  ;;  %v1441_v58 = vand.u32 2147483647, %v3163_v19 }
 0x19f   : > { %v3165_v23 = vpop.eup %2585  ;;  %v1389_v24 = vsub.f32 1.0, %v1388_v28 }
 0x1a0   : > { %v2588_v31 = vpop.eup %2587  ;;  %v1403_v37 = vmul.f32 %v3165_v23, %v3153_v3  ;;  %vm1408_vm1 = vweird.f32 %v3165_v23  ;;  %v1444_v17 = vor.u32 1.1754944e-38, %v1443_v2 }
 0x1a1   : > { %v1390_v39 = vmul.f32 %v2584_v27, %v1389_v24  ;;  %v3175_v30 = vadd.f32 1.0, %v2588_v31 }
 0x1a2   : > { %v2590_v38 = vpop.eup %2589  ;;  %v1404_v32 = vsub.f32 1.0, %v1403_v37 }
 0x1a3   : > { %v2592_v40 = vpop.eup %2591  ;;  %v1391_v42 = vadd.f32 %v2584_v27, %v1390_v39  ;;  %v1373_v43 = vmul.f32 %v2590_v38, %v3159_v21  ;;  %2595 = vrcp.f32 %v3175_v30  ;;  %vm1378_vm15 = vweird.f32 %v2590_v38 }
 0x1a4   : > { %v2594_v50 = vpop.eup %2593  ;;  %v1405_v46 = vmul.f32 %v3165_v23, %v1404_v32  ;;  %v3183_v54 = vadd.f32 1.0, %v2592_v40  ;;  %vm1379_vm10 = vmor %vm1377_vm0, %vm1378_vm15  ;;  %vm1437_vm15 = vweird.f32 %v3163_v19  ;;  %v1458_v24 = vand.u32 2147483648, %v3175_v30 }
 0x1a5   : > { %v1395_v51 = vsel %vm1394_vm12, %v2584_v27, %v1391_v42  ;;  %v1374_v53 = vsub.f32 1.0, %v1373_v43  ;;  %v1433_v56 = vmul.f32 %v2594_v50, %v3163_v19  ;;  %vm1438_vm11 = vweird.f32 %v2594_v50 }
 0x1a6   : > { %v1400_v52 = vsel %vm1397_vm13, %v1399_v45, %v1395_v51  ;;  %2597 = vrcp.f32 %v3183_v54  ;;  %v1406_v62 = vadd.f32 %v3165_v23, %v1405_v46  ;;  %vm1382_vm12 = vcmp.eq.f32.partialorder %v1381_v63, 8.507059e+37  ;;  %vm3205_vm13 = vmor %vm1407_vm14, %vm1408_vm1  ;;  %v1605_v51 = vpop.permute.xlu2 %1604 }
 0x1a7   : > { %v1463_v60 = vmul.f32 %v1400_v52, %v3131_v47  ;;  %v1375_v61 = vmul.f32 %v2590_v38, %v1374_v53  ;;  %v1434_v36 = vsub.f32 1.0, %v1433_v56  ;;  %vm1439_vm0 = vmor %vm1437_vm15, %vm1438_vm11  ;;  %vm1442_vm14 = vcmp.eq.f32.partialorder %v1441_v58, 8.507059e+37 }
 0x1a8   : > { %v1410_v59 = vsel %vm3205_vm13, %v3165_v23, %v1406_v62  ;;  %vm1412_vm1 = vcmp.eq.f32.partialorder %v1411_v8, 8.507059e+37  ;;  %v1478_v27 = vperm.slane %v3171_v29, 2  ;;  %v1456_v23 = vand.u32 2147483647, %v3175_v30 }
 0x1a9   : > { %v3192_v44 = vpop.eup %2595  ;;  %v1376_v0 = vadd.f32 %v2590_v38, %v1375_v61  ;;  %v1435_v47 = vmul.f32 %v2594_v50, %v1434_v36  ;;  %v1483_v10 = vmul.f32 %v1477_v34, %v1463_v60  ;;  %v1415_v26 = vsel %vm1412_vm1, %v1414_v18, %v1410_v59 }
 0x1aa   : > { %v1448_v7 = vmul.f32 %v3192_v44, %v3175_v30  ;;  %vm1453_vm11 = vweird.f32 %v3192_v44  ;;  %v1428_v31 = vand.u32 2147483648, %v3183_v54  ;;  %v1464_v33 = vmul.f32 %v1415_v26, %v3136_v57 }
 0x1ab   : > { %v1380_v9 = vsel %vm1379_vm10, %v2590_v38, %v1376_v0  ;;  %v1436_v14 = vadd.f32 %v2594_v50, %v1435_v47  ;;  %1496 = vrot.lane.b32.xlu1 %v1483_v10, %s2716_s28  ;;  %vm1452_vm10 = vweird.f32 %v3175_v30  ;;  %v1426_v37 = vand.u32 2147483647, %v3183_v54 }
 0x1ac   : > { %v1385_v13 = vsel %vm1382_vm12, %v1384_v1, %v1380_v9  ;;  %v1449_v41 = vsub.f32 1.0, %v1448_v7  ;;  %v2598_v16 = vpop.eup %2597  ;;  %vm1454_vm13 = vmor %vm1452_vm10, %vm1453_vm11  ;;  %vm1422_vm15 = vweird.f32 %v3183_v54  ;;  %v1459_v30 = vor.u32 1.1754944e-38, %v1458_v24  ;;  %v1556_v1 = vpop.permute.xlu0 %1555 }
 0x1ad   : > { %v1462_v4 = vmul.f32 %v1385_v13, %v3142_v5  ;;  %v1440_v3 = vsel %vm1439_vm0, %v2594_v50, %v1436_v14  ;;  %v1418_v21 = vmul.f32 %v2598_v16, %v3183_v54  ;;  %vm1423_vm12 = vweird.f32 %v2598_v16 }
 0x1ae   : > { %v1450_v20 = vmul.f32 %v3192_v44, %v1449_v41  ;;  %v1445_v25 = vsel %vm1442_vm14, %v1444_v17, %v1440_v3  ;;  %vm1424_vm0 = vmor %vm1422_vm15, %vm1423_vm12  ;;  %v1429_v32 = vor.u32 1.1754944e-38, %v1428_v31  ;;  %vm1457_vm14 = vcmp.eq.f32.partialorder %v1456_v23, 8.507059e+37  ;;  %v3242_v46 = vpop.permute.xlu2 %1653 }
 0x1af   : > { %v1482_v6 = vmul.f32 %v1476_v49, %v1462_v4  ;;  %v1466_v5 = vmul.f32 %v1445_v25, %v3147_v11  ;;  %v1419_v19 = vsub.f32 1.0, %v1418_v21  ;;  %vm1427_vm1 = vcmp.eq.f32.partialorder %v1426_v37, 8.507059e+37 }
 0x1b0   : > { %v1451_v28 = vadd.f32 %v3192_v44, %v1450_v20  ;;  %vm1468_vm10 = vcmask 154624   ;;  %v2717_v53 = vmov 0.0   ;;  %vm1471_vm11 = vcmask 572824  }
 0x1b1   : > { %1494 = vrot.lane.b32.xlu2 %v1482_v6, %s2716_s28  ;;  %v1486_v11 = vmul.f32 %v1477_v34, %v1466_v5  ;;  %v1420_v35 = vmul.f32 %v2598_v16, %v1419_v19  ;;  %v1484_v34 = vmul.f32 %v1478_v27, %v1464_v33  ;;  %1469 = vst.msk [vmem:[#allocation2] sm:$0xff] %vm1468_vm10, %v2717_v53  ;;  %vm1516_vm12 = vcmask 1047704  }
 0x1b2   : > { %v1455_v39 = vsel %vm1454_vm13, %v3192_v44, %v1451_v28  ;;  %1470 = vst.msk [vmem:[#allocation2 + $0x18] sm:$0xff] %vm1468_vm10, %v2717_v53  ;;  %vm1519_vm13 = vcmask 416768  }
 0x1b3   : > { %v1421_v38 = vadd.f32 %v2598_v16, %v1420_v35  ;;  %1502 = vrot.lane.b32.xlu1 %v1486_v11, %s2716_s28  ;;  %v1460_v57 = vsel %vm1457_vm14, %v1459_v30, %v1455_v39  ;;  %1472 = vst.msk [vmem:[#allocation2 + $0x10] sm:$0xff] %vm1471_vm11, %v2717_v53 }
 0x1b4   : > { %v1467_v45 = vmul.f32 %v1460_v57, %v3151_v15  ;;  %1473 = vst.msk [vmem:[#allocation2 + $0x28] sm:$0xff] %vm1471_vm11, %v2717_v53  ;;  %v3267_v62 = vpop.permute.xlu0 %1657 }
 0x1b5   : > { %v1425_v40 = vsel %vm1424_vm0, %v2598_v16, %v1421_v38 }
 0x1b6   : > { %v1430_v42 = vsel %vm1427_vm1, %v1429_v32, %v1425_v40  ;;  %v1487_v50 = vmul.f32 %v1478_v27, %v1467_v45  ;;  %v3248_v15 = vpop.permute.xlu2 %1706 }
 0x1b7   : > { %v1465_v43 = vmul.f32 %v1430_v42, %v3156_v22  ;;  %v3246_v22 = vpop.permute.xlu1 %1559 }
 0x1b9   : > { %1498 = vrot.lane.b32.xlu2 %v1484_v34, %s2716_s28  ;;  %v1485_v48 = vmul.f32 %v1476_v49, %v1465_v43 }
 0x1bb   : > { %1500 = vrot.lane.b32.xlu0 %v1485_v48, %s2716_s28 }
 0x1bc   : > { %v1801_v7 = vpop.permute.xlu0 %1800 }
 0x1be   : > { %v3252_v49 = vpop.permute.xlu2 %1755 }
 0x1bf   : > { %v3250_v29 = vpop.permute.xlu1 %1608 }
 0x1c1   : > { %1504 = vrot.lane.b32.xlu2 %v1487_v50, %s2716_s28  ;;  %s3694_s28 = smov 108  }
 0x1c4   : > { %v3279_v59 = vpop.permute.xlu0 %1902 }
 0x1c6   : > { %v3256_v52 = vpop.permute.xlu2 %1849 }
 0x1c7   : > { %v3254_v54 = vpop.permute.xlu1 %1702 }
 0x1ce   : > { %v3260_v56 = vpop.permute.xlu2 %1898 }
 0x1cf   : > { %v3258_v55 = vpop.permute.xlu1 %1751 }
 0x1d6   : > { %v1540_v61 = vpop.permute.xlu2 %1539 }
 0x1d7   : > { %v3262_v60 = vpop.permute.xlu1 %1804 }
 0x1df   : > { %v3264_v63 = vpop.permute.xlu1 %1853 }
 0x1e7   : > { %v1535_v44 = vpop.permute.xlu1 %1534 }
 0x20b   : > { %v1495_v36 = vpop.permute.xlu2 %1494 }
 0x20c   : > { %1517 = vst.msk [vmem:[#allocation2] sm:$0xff] %vm1516_vm12, %v1495_v36 }
 0x213   : > { %v1524_v0 = vld [vmem:[#allocation2] sm:$0xff]  ;;  %v1499_v8 = vpop.permute.xlu2 %1498 }
 0x214   : > { %v3269_v2 = vmul.f32 %v1535_v44, %v1524_v0  ;;  %v1562_v47 = vmul.f32 %v1556_v1, %v1524_v0  ;;  %v1611_v58 = vmul.f32 %v1605_v51, %v1524_v0  ;;  %v1660_v41 = vmul.f32 %v3242_v46, %v1524_v0 }
 0x215   : > { %v1709_v25 = vmul.f32 %v3254_v54, %v1524_v0  ;;  %v1758_v19 = vmul.f32 %v3258_v55, %v1524_v0  ;;  %v1807_v39 = vmul.f32 %v1801_v7, %v1524_v0  ;;  %v1856_v32 = vmul.f32 %v3256_v52, %v1524_v0 }
 0x216   : > { %1574 = vrot.lane.b32.xlu1 %v1562_v47, %s3690_s29  ;;  %v1905_v57 = vmul.f32 %v3260_v56, %v1524_v0 }
 0x21b   : > { %v1505_v4 = vpop.permute.xlu2 %1504 }
 0x21d   : > { %v1497_v9 = vpop.permute.xlu1 %1496 }
 0x21e   : > { %1623 = vrot.lane.b32.xlu1 %v1611_v58, %s3691_s26  ;;  %v1506_v10 = vsel %vm1468_vm10, %v1495_v36, %v1497_v9  ;;  %v1507_v12 = vsel %vm1468_vm10, %v1497_v9, %v1499_v8 }
 0x21f   : > { %v1563_v13 = vmul.f32 %v1556_v1, %v1506_v10  ;;  %1520 = vst.msk [vmem:[#allocation2 + $0x10] sm:$0xff] %vm1519_vm13, %v1507_v12  ;;  %v3276_v14 = vmul.f32 %v1535_v44, %v1506_v10  ;;  %v1612_v3 = vmul.f32 %v1605_v51, %v1506_v10  ;;  %v1661_v5 = vmul.f32 %v3242_v46, %v1506_v10 }
 0x220   : > { %v1710_v33 = vmul.f32 %v3254_v54, %v1506_v10  ;;  %v1759_v38 = vmul.f32 %v3258_v55, %v1506_v10  ;;  %v1808_v40 = vmul.f32 %v1801_v7, %v1506_v10  ;;  %v1857_v42 = vmul.f32 %v3256_v52, %v1506_v10 }
 0x221   : > { %1576 = vrot.lane.b32.xlu2 %v1563_v13, %s3690_s29  ;;  %v1906_v48 = vmul.f32 %v3260_v56, %v1506_v10 }
 0x225   : > { %v1503_v17 = vpop.permute.xlu1 %1502 }
 0x226   : > { %1672 = vrot.lane.b32.xlu1 %v1660_v41, %s3692_s27  ;;  %v1509_v16 = vsel %vm1468_vm10, %v1503_v17, %v1505_v4  ;;  %v1526_v18 = vld [vmem:[#allocation2 + $0x10] sm:$0xff] }
 0x227   : > { %1523 = vst.msk [vmem:[#allocation2 + $0x28] sm:$0xff] %vm1519_vm13, %v1509_v16  ;;  %v1564_v20 = vmul.f32 %v1556_v1, %v1526_v18  ;;  %v3286_v21 = vmul.f32 %v1535_v44, %v1526_v18  ;;  %v1613_v27 = vmul.f32 %v1605_v51, %v1526_v18  ;;  %v1662_v35 = vmul.f32 %v3242_v46, %v1526_v18 }
 0x228   : > { %v1711_v30 = vmul.f32 %v3254_v54, %v1526_v18  ;;  %v1760_v34 = vmul.f32 %v3258_v55, %v1526_v18  ;;  %v1809_v43 = vmul.f32 %v1801_v7, %v1526_v18  ;;  %v1858_v50 = vmul.f32 %v3256_v52, %v1526_v18 }
 0x229   : > { %1625 = vrot.lane.b32.xlu2 %v1612_v3, %s3691_s26  ;;  %1578 = vrot.lane.b32.xlu0 %v1564_v20, %s3690_s29  ;;  %v1907_v53 = vmul.f32 %v3260_v56, %v1526_v18  ;;  %v1946_v18 = vld [vmem:[%s3660_s5] sm:$0xff] }
 0x22d   : > { %v1501_v6 = vpop.permute.xlu0 %1500 }
 0x22e   : > { %1721 = vrot.lane.b32.xlu1 %v1709_v25, %s3693_s21  ;;  %v3290_v26 = vsel %vm1468_vm10, %v1501_v6, %v1503_v17  ;;  %1521 = vst.msk [vmem:[#allocation2 + $0x18] sm:$0xff] %vm1516_vm12, %v1501_v6  ;;  %v3294_v28 = vld [vmem:[#allocation2 + $0x28] sm:$0xff]  ;;  %vm2099_vm10 = vcmask 261120  }
 0x22f   : > { %v3301_v23 = vmul.f32 %v3279_v59, %v3290_v26  ;;  %v3304_v24 = vmul.f32 %v1540_v61, %v3290_v26  ;;  %v3307_v31 = vmul.f32 %v1540_v61, %v3294_v28  ;;  %v1566_v46 = vmul.f32 %v3246_v22, %v3290_v26 }
 0x230   : > { %v1615_v52 = vmul.f32 %v3250_v29, %v3290_v26  ;;  %v1567_v55 = vmul.f32 %v3246_v22, %v3294_v28  ;;  %v1616_v1 = vmul.f32 %v3250_v29, %v3294_v28  ;;  %v1713_v36 = vmul.f32 %v3248_v15, %v3290_v26 }
 0x231   : > { %1674 = vrot.lane.b32.xlu2 %v1661_v5, %s3692_s27  ;;  %1627 = vrot.lane.b32.xlu0 %v1613_v27, %s3691_s26  ;;  %v1665_v44 = vmul.f32 %v3267_v62, %v3294_v28  ;;  %v1762_v47 = vmul.f32 %v3252_v49, %v3290_v26  ;;  %v1714_v58 = vmul.f32 %v3248_v15, %v3294_v28 }
 0x232   : > { %v1811_v10 = vmul.f32 %v3262_v60, %v3290_v26  ;;  %v1763_v12 = vmul.f32 %v3252_v49, %v3294_v28  ;;  %v1860_v16 = vmul.f32 %v3264_v63, %v3290_v26  ;;  %v1861_v6 = vmul.f32 %v3264_v63, %v3294_v28 }
 0x235   : > { %v3310_v11 = vld [vmem:[#allocation2 + $0x18] sm:$0xff] }
 0x236   : > { %1770 = vrot.lane.b32.xlu1 %v1758_v19, %s3694_s28  ;;  %v3315_v37 = vmul.f32 %v1540_v61, %v3310_v11  ;;  %v1565_v45 = vmul.f32 %v3246_v22, %v3310_v11  ;;  %v1614_v51 = vmul.f32 %v3250_v29, %v3310_v11  ;;  %v1663_v54 = vmul.f32 %v3267_v62, %v3310_v11 }
 0x237   : > { %v1712_v56 = vmul.f32 %v3248_v15, %v3310_v11  ;;  %v1664_v61 = vmul.f32 %v3267_v62, %v3290_v26  ;;  %v1761_v22 = vmul.f32 %v3252_v49, %v3310_v11  ;;  %v1810_v29 = vmul.f32 %v3262_v60, %v3310_v11 }
 0x238   : > { %v1859_v62 = vmul.f32 %v3264_v63, %v3310_v11  ;;  %v1908_v13 = vmul.f32 %v3279_v59, %v3310_v11  ;;  %v1812_v49 = vmul.f32 %v3262_v60, %v3294_v28 }
 0x239   : > { %1723 = vrot.lane.b32.xlu2 %v1710_v33, %s3693_s21  ;;  %1676 = vrot.lane.b32.xlu0 %v1662_v35, %s3692_s27  ;;  %v1947_v35 = vld [vmem:[%s3660_s5 + $0x8] sm:$0xff] }
 0x23e   : > { %1819 = vrot.lane.b32.xlu1 %v1807_v39, %s2704_s22 }
 0x241   : > { %1772 = vrot.lane.b32.xlu2 %v1759_v38, %s3694_s28  ;;  %1725 = vrot.lane.b32.xlu0 %v1711_v30, %s3693_s21 }
 0x246   : > { %1868 = vrot.lane.b32.xlu1 %v1856_v32, %s2705_s19 }
 0x249   : > { %1821 = vrot.lane.b32.xlu2 %v1808_v40, %s2704_s22  ;;  %1774 = vrot.lane.b32.xlu0 %v1760_v34, %s3694_s28 }
 0x24e   : > { %1917 = vrot.lane.b32.xlu1 %v1905_v57, %s2706_s30 }
 0x251   : > { %1870 = vrot.lane.b32.xlu2 %v1857_v42, %s2705_s19  ;;  %1823 = vrot.lane.b32.xlu0 %v1809_v43, %s2704_s22 }
 0x256   : > { %1580 = vrot.lane.b32.xlu1 %v1565_v45, %s3690_s29 }
 0x259   : > { %1919 = vrot.lane.b32.xlu2 %v1906_v48, %s2706_s30  ;;  %1872 = vrot.lane.b32.xlu0 %v1858_v50, %s2705_s19 }
 0x25e   : > { %1629 = vrot.lane.b32.xlu1 %v1614_v51, %s3691_s26 }
 0x261   : > { %1582 = vrot.lane.b32.xlu2 %v1566_v46, %s3690_s29  ;;  %1921 = vrot.lane.b32.xlu0 %v1907_v53, %s2706_s30 }
 0x266   : > { %1678 = vrot.lane.b32.xlu1 %v1663_v54, %s3692_s27 }
 0x269   : > { %1631 = vrot.lane.b32.xlu2 %v1615_v52, %s3691_s26  ;;  %1584 = vrot.lane.b32.xlu0 %v1567_v55, %s3690_s29  ;;  %s2495_s29 = smul.u32 12, %s2817_s8 }
 0x26e   : > { %1727 = vrot.lane.b32.xlu1 %v1712_v56, %s3693_s21 }
 0x271   : > { %1680 = vrot.lane.b32.xlu2 %v1664_v61, %s3692_s27  ;;  %1633 = vrot.lane.b32.xlu0 %v1616_v1, %s3691_s26 }
 0x276   : > { %1776 = vrot.lane.b32.xlu1 %v1761_v22, %s3694_s28 }
 0x279   : > { %1729 = vrot.lane.b32.xlu2 %v1713_v36, %s3693_s21  ;;  %1682 = vrot.lane.b32.xlu0 %v1665_v44, %s3692_s27  ;;  %s2302_s27 = scalar_lea.hbm %s3669_s14, %s2495_s29 }
 0x27a   : > { %s2306_s8 = sshll.u32 %s2302_s27, 4  ;;  %s2307_s8 = int_to_ptr.hbm [resolvable:$true] %s2306_s8 }
 0x27b   : > { %v1577_v0 = vpop.permute.xlu2 %1576  ;;  %s2649_s26 = sshra.s32 %s2307_s8, 4  ;;  %s2650_s26 = int_to_ptr.hbm [resolvable:$true] %s2649_s26 }
 0x27c   : > { %p2656_p0 = scmp.lt.s32.totalorder %s2650_s26, %s3669_s14 }
 0x27e   : > { %1825 = vrot.lane.b32.xlu1 %v1810_v29, %s2704_s22 }
 0x281   : > { %1778 = vrot.lane.b32.xlu2 %v1762_v47, %s3694_s28  ;;  %1731 = vrot.lane.b32.xlu0 %v1714_v58, %s3693_s21  ;;  %s475_s21 = sand.u32 1, %s2689_s16  }
 0x282   : > { %s2291_s29 = scalar_lea.sflag [#allocation5], %s475_s21 }
 0x283   : > { %v1626_v7 = vpop.permute.xlu2 %1625 }
 0x286   : > { %1874 = vrot.lane.b32.xlu1 %v1859_v62, %s2705_s19 }
 0x288   : > { %v1575_v8 = vpop.permute.xlu1 %1574 }
 0x289   : > { %v1587_v9 = vsel %vm540_vm3, %v1575_v8, %v1577_v0  ;;  %1827 = vrot.lane.b32.xlu2 %v1811_v10, %s2704_s22  ;;  %1780 = vrot.lane.b32.xlu0 %v1763_v12, %s3694_s28  ;;  %s2493_s28 = smul.u32 12, %s475_s21 }
 0x28a   : > { %v1597_v15 = vadd.f32 %v1587_v9, %v3269_v2 }
 0x28b   : > { %v1675_v41 = vpop.permute.xlu2 %1674 }
 0x28e   : > { %1923 = vrot.lane.b32.xlu1 %v1908_v13, %s2706_s30 }
 0x290   : > { %v1624_v4 = vpop.permute.xlu1 %1623 }
 0x291   : > { %v1636_v17 = vsel %vm691_vm2, %v1624_v4, %v1626_v7  ;;  %1876 = vrot.lane.b32.xlu2 %v1860_v16, %s2705_s19  ;;  %1829 = vrot.lane.b32.xlu0 %v1812_v49, %s2704_s22  ;;  %s2651_s22 = scalar_lea.hbm %s2650_s26, 12 }
 0x292   : > { %v1646_v2 = vadd.f32 %v1636_v17, %v1597_v15  ;;  %p2652_p11 = scmp.ne.s32.totalorder %s2650_s26, %s2651_s22  ;;  %p2657_p1 = scmp.lt.s32.totalorder %s2655_s0, %s2651_s22 }
 0x293   : > { %v1724_v3 = vpop.permute.xlu2 %1723 }
 0x294   : > { %p2653_p12 = pnand %p2652_p11, %p2834_p5  ;;  %p2658_p2 = por %p2657_p1, %p2656_p0 }
 0x296   : > { %1950 = vperm.xlu1 %2572, %v1946_v18   ;;  %p2654_p13 = pneg %p2653_p12 }
 0x298   : > { %v1673_v20 = vpop.permute.xlu1 %1672  ;;  %p2659_p3 = pnand %p2658_p2, %p2654_p13 }
 0x299   : > { %v1685_v25 = vsel %vm787_vm4, %v1673_v20, %v1675_v41  ;;  %1925 = vrot.lane.b32.xlu2 %v3301_v23, %s2706_s30  ;;  %1878 = vrot.lane.b32.xlu0 %v1861_v6, %s2705_s19  ;;  %v1910_v23 = vmul.f32 %v3279_v59, %v3294_v28  ;;  %s477_s19 = scalar_lea.vmem [#allocation4], %s2493_s28 }
 0x29a   : > { %v1695_v26 = vadd.f32 %v1685_v25, %v1646_v2 }
 0x29b   : > { %v1773_v60 = vpop.permute.xlu2 %1772  ;;  %v1579_v5 = vpop.permute.xlu0 %1578 }
 0x29c   : > { %v1588_v27 = vsel %vm540_vm3, %v1577_v0, %v1579_v5  ;;  %v1599_v19 = vadd.f32 %v1579_v5, %v3286_v21 }
 0x29d   : > { %v1598_v11 = vadd.f32 %v1588_v27, %v3276_v14 }
 0x2a0   : > { %v1722_v33 = vpop.permute.xlu1 %1721 }
 0x2a1   : > { %v1734_v63 = vsel %vm883_vm5, %v1722_v33, %v1724_v3  ;;  %1955 = vperm.xlu2 %2573, %v1947_v35   ;;  %1927 = vrot.lane.b32.xlu0 %v1910_v23, %s2706_s30  ;;  %s2304_s30 = sshll.u32 %s477_s19, 4  ;;  %s2305_s30 = int_to_ptr.vmem [resolvable:$true] %s2304_s30 }
 0x2a2   : > { %v1744_v39 = vadd.f32 %v1734_v63, %v1695_v26 }
 0x2a3   : > { %v3425_v38 = vpop.permute.xlu2 %1821  ;;  %v1628_v30 = vpop.permute.xlu0 %1627 }
 0x2a4   : > { %v1637_v21 = vsel %vm691_vm2, %v1626_v7, %v1628_v30  ;;  %v1648_v14 = vadd.f32 %v1628_v30, %v1599_v19 }
 0x2a5   : > { %v1647_v32 = vadd.f32 %v1637_v21, %v1598_v11 }
 0x2a8   : > { %v1771_v40 = vpop.permute.xlu1 %1770 }
 0x2a9   : > { %v1783_v34 = vsel %vm979_vm6, %v1771_v40, %v1773_v60 }
 0x2aa   : > { %v1793_v57 = vadd.f32 %v1783_v34, %v1744_v39 }
 0x2ab   : > { %v3429_v42 = vpop.permute.xlu2 %1870  ;;  %v1677_v43 = vpop.permute.xlu0 %1676 }
 0x2ac   : > { %v1686_v59 = vsel %vm787_vm4, %v1675_v41, %v1677_v43  ;;  %v1697_v28 = vadd.f32 %v1677_v43, %v1648_v14 }
 0x2ad   : > { %v1696_v45 = vadd.f32 %v1686_v59, %v1647_v32 }
 0x2b0   : > { %v1820_v48 = vpop.permute.xlu1 %1819 }
 0x2b1   : > { %v1832_v50 = vsel %vm1075_vm7, %v1820_v48, %v3425_v38 }
 0x2b2   : > { %v1842_v51 = vadd.f32 %v1832_v50, %v1793_v57 }
 0x2b3   : > { %v1920_v46 = vpop.permute.xlu2 %1919  ;;  %v1726_v53 = vpop.permute.xlu0 %1725 }
 0x2b4   : > { %v1735_v54 = vsel %vm883_vm5, %v1724_v3, %v1726_v53  ;;  %v1746_v52 = vadd.f32 %v1726_v53, %v1697_v28 }
 0x2b5   : > { %v1745_v55 = vadd.f32 %v1735_v54, %v1696_v45 }
 0x2b8   : > { %v1869_v56 = vpop.permute.xlu1 %1868 }
 0x2b9   : > { %v1881_v61 = vsel %vm1171_vm8, %v1869_v56, %v3429_v42 }
 0x2ba   : > { %v1891_v1 = vadd.f32 %v1881_v61, %v1842_v51 }
 0x2bb   : > { %v3437_v22 = vpop.permute.xlu2 %1582  ;;  %v1775_v36 = vpop.permute.xlu0 %1774 }
 0x2bc   : > { %v1784_v44 = vsel %vm979_vm6, %v1773_v60, %v1775_v36  ;;  %v1795_v29 = vadd.f32 %v1775_v36, %v1746_v52 }
 0x2bd   : > { %v1794_v0 = vadd.f32 %v1784_v44, %v1745_v55 }
 0x2c0   : > { %v1918_v47 = vpop.permute.xlu1 %1917 }
 0x2c1   : > { %v1930_v58 = vsel %vm1267_vm9, %v1918_v47, %v1920_v46 }
 0x2c2   : > { %v1940_v62 = vadd.f32 %v1930_v58, %v1891_v1 }
 0x2c3   : > { %v3441_v7 = vpop.permute.xlu2 %1631  ;;  %v1824_v8 = vpop.permute.xlu0 %1823 }
 0x2c4   : > { %v1833_v34 = vsel %vm1075_vm7, %v3425_v38, %v1824_v8  ;;  %v1844_v50 = vadd.f32 %v1824_v8, %v1795_v29 }
 0x2c5   : > { %v1843_v48 = vadd.f32 %v1833_v34, %v1794_v0 }
 0x2c8   : > { %v1581_v9 = vpop.permute.xlu1 %1580 }
 0x2c9   : > { %v1589_v10 = vsel %vm540_vm3, %v1581_v9, %v3437_v22 }
 0x2ca   : > { %v1600_v12 = vadd.f32 %v1589_v10, %v3315_v37 }
 0x2cb   : > { %v3446_v15 = vpop.permute.xlu2 %1680  ;;  %v1873_v13 = vpop.permute.xlu0 %1872 }
 0x2cc   : > { %v1882_v28 = vsel %vm1171_vm8, %v3429_v42, %v1873_v13  ;;  %v1893_v38 = vadd.f32 %v1873_v13, %v1844_v50 }
 0x2cd   : > { %v1892_v52 = vadd.f32 %v1882_v28, %v1843_v48 }
 0x2d0   : > { %v1630_v41 = vpop.permute.xlu1 %1629 }
 0x2d1   : > { %v1638_v60 = vsel %vm691_vm2, %v1630_v41, %v3441_v7 }
 0x2d2   : > { %v1649_v27 = vadd.f32 %v1638_v60, %v1600_v12 }
 0x2d3   : > { %v3448_v4 = vpop.permute.xlu2 %1729  ;;  %v1922_v17 = vpop.permute.xlu0 %1921 }
 0x2d4   : > { %v1931_v53 = vsel %vm1267_vm9, %v1920_v46, %v1922_v17  ;;  %v1942_v61 = vadd.f32 %v1922_v17, %v1893_v38 }
 0x2d5   : > { %v1941_v56 = vadd.f32 %v1931_v53, %v1892_v52 }
 0x2d8   : > { %v1679_v16 = vpop.permute.xlu1 %1678 }
 0x2d9   : > { %v1687_v5 = vsel %vm787_vm4, %v1679_v16, %v3446_v15 }
 0x2da   : > { %v1698_v33 = vadd.f32 %v1687_v5, %v1649_v27 }
 0x2db   : > { %v3450_v49 = vpop.permute.xlu2 %1778  ;;  %v1585_v2 = vpop.permute.xlu0 %1584 }
 0x2dc   : > { %v1590_v46 = vsel %vm540_vm3, %v3437_v22, %v1585_v2  ;;  %v1602_v8 = vadd.f32 %v1585_v2, %v3307_v31 }
 0x2dd   : > { %v1601_v9 = vadd.f32 %v1590_v46, %v3304_v24 }
 0x2e0   : > { %v1728_v18 = vpop.permute.xlu1 %1727 }
 0x2e1   : > { %v1736_v11 = vsel %vm883_vm5, %v1728_v18, %v3448_v4 }
 0x2e2   : > { %v1747_v39 = vadd.f32 %v1736_v11, %v1698_v33 }
 0x2e3   : > { %v3452_v3 = vpop.permute.xlu2 %1827  ;;  %v1634_v20 = vpop.permute.xlu0 %1633 }
 0x2e4   : > { %v1651_v12 = vadd.f32 %v1634_v20, %v1602_v8 }
 0x2e8   : > { %v1777_v25 = vpop.permute.xlu1 %1776 }
 0x2e9   : > { %v1785_v63 = vsel %vm979_vm6, %v1777_v25, %v3450_v49 }
 0x2ea   : > { %v1796_v21 = vadd.f32 %v1785_v63, %v1747_v39 }
 0x2eb   : > { %v1683_v6 = vpop.permute.xlu0 %1682  ;;  %v3454_v26 = vpop.permute.xlu2 %1876 }
 0x2ec   : > { %v1688_v22 = vsel %vm787_vm4, %v3446_v15, %v1683_v6  ;;  %v1700_v17 = vadd.f32 %v1683_v6, %v1651_v12 }
 0x2f0   : > { %v1826_v37 = vpop.permute.xlu1 %1825 }
 0x2f1   : > { %v1834_v30 = vsel %vm1075_vm7, %v1826_v37, %v3452_v3 }
 0x2f2   : > { %v1845_v32 = vadd.f32 %v1834_v30, %v1796_v21 }
 0x2f3   : > { %v1732_v19 = vpop.permute.xlu0 %1731  ;;  %v3464_v23 = vpop.permute.xlu2 %1925 }
 0x2f4   : > { %v1737_v16 = vsel %vm883_vm5, %v3448_v4, %v1732_v19  ;;  %v1749_v18 = vadd.f32 %v1732_v19, %v1700_v17 }
 0x2f8   : > { %v1875_v35 = vpop.permute.xlu1 %1874 }
 0x2f9   : > { %v1883_v14 = vsel %vm1171_vm8, %v1875_v35, %v3454_v26 }
 0x2fa   : > { %v1894_v57 = vadd.f32 %v1883_v14, %v1845_v32 }
 0x2fb   : > { %v1781_v40 = vpop.permute.xlu0 %1780  ;;  %v3476_v51 = vpop.permute.xlu2 %1955 }
 0x2fc   : > { %v1798_v15 = vadd.f32 %v1781_v40, %v1749_v18 }
 0x300   : > { %v1924_v43 = vpop.permute.xlu1 %1923 }
 0x301   : > { %v1932_v59 = vsel %vm1267_vm9, %v1924_v43, %v3464_v23 }
 0x302   : > { %v1943_v45 = vadd.f32 %v1932_v59, %v1894_v57 }
 0x303   : > { %v1830_v55 = vpop.permute.xlu0 %1829 }
 0x304   : > { %v3480_v54 = vadd.f32 %v3476_v51, %v1943_v45  ;;  %v1835_v5 = vsel %vm1075_vm7, %v3452_v3, %v1830_v55  ;;  %v1847_v4 = vadd.f32 %v1830_v55, %v1798_v15  ;;  %v3517_v3 = vld [vmem:[%s3661_s6] sm:$0x7] }
 0x305   : > { %v2086_v34 = vperm.slane %v3517_v3, 0  ;;  %v2087_v57 = vperm.slane %v3517_v3, 1  ;;  %v2088_v15 = vperm.slane %v3517_v3, 2 }
 0x306   : > { %v2472_v1 = vmul.f32 -1.442695, %v3480_v54 }
 0x308   : > { %v1951_v36 = vpop.permute.xlu1 %1950  ;;  %2599 = vpow2.f32 %v2472_v1 }
 0x309   : > { %v3483_v44 = vadd.f32 %v1951_v36, %v1940_v62  ;;  %v3485_v42 = vadd.f32 %v1951_v36, %v1941_v56  ;;  %v3487_v29 = vadd.f32 %v1951_v36, %v1942_v61  ;;  %v1639_v62 = vsel %vm691_vm2, %v3441_v7, %v1634_v20 }
 0x30a   : > { %v1650_v13 = vadd.f32 %v1639_v62, %v1601_v9  ;;  %v1786_v7 = vsel %vm979_vm6, %v3450_v49, %v1781_v40 }
 0x30b   : > { %v2469_v0 = vmul.f32 -1.442695, %v3483_v44  ;;  %v2470_v47 = vmul.f32 -1.442695, %v3485_v42  ;;  %v2471_v58 = vmul.f32 -1.442695, %v3487_v29  ;;  %v1879_v10 = vpop.permute.xlu0 %1878 }
 0x30c   : > { %v1699_v31 = vadd.f32 %v1688_v22, %v1650_v13  ;;  %v1884_v49 = vsel %vm1171_vm8, %v3454_v26, %v1879_v10  ;;  %v1896_v35 = vadd.f32 %v1879_v10, %v1847_v4 }
 0x30d   : > { %2601 = vpow2.f32 %v2469_v0 }
 0x30e   : > { %2603 = vpow2.f32 %v2470_v47  ;;  %v2600_v41 = vpop.eup %2599  ;;  %v1748_v25 = vadd.f32 %v1737_v16, %v1699_v31 }
 0x30f   : > { %2605 = vpow2.f32 %v2471_v58  ;;  %v3504_v37 = vadd.f32 1.0, %v2600_v41 }
 0x310   : > { %v1797_v27 = vadd.f32 %v1786_v7, %v1748_v25 }
 0x311   : > { %vm2038_vm12 = vweird.f32 %v3504_v37 }
 0x312   : > { %v1846_v19 = vadd.f32 %v1835_v5, %v1797_v27 }
 0x313   : > { %v2602_v2 = vpop.eup %2601  ;;  %v1928_v33 = vpop.permute.xlu0 %1927 }
 0x314   : > { %v2604_v24 = vpop.eup %2603  ;;  %v1982_v20 = vadd.f32 1.0, %v2602_v2  ;;  %v1895_v63 = vadd.f32 %v1884_v49, %v1846_v19  ;;  %v1933_v39 = vsel %vm1267_vm9, %v3464_v23, %v1928_v33  ;;  %v1945_v30 = vadd.f32 %v1928_v33, %v1896_v35 }
 0x315   : > { %v2606_v60 = vpop.eup %2605  ;;  %v1983_v6 = vadd.f32 1.0, %v2604_v24 }
 0x316   : > { %v3508_v11 = vadd.f32 1.0, %v2606_v60  ;;  %2607 = vrcp.f32 %v1982_v20  ;;  %v1944_v14 = vadd.f32 %v1933_v39, %v1895_v63  ;;  %v3522_v40 = vadd.f32 %v3476_v51, %v1945_v30 }
 0x317   : > { %2609 = vrcp.f32 %v1983_v6  ;;  %vm1993_vm2 = vweird.f32 %v1982_v20  ;;  %v1997_v59 = vand.u32 2147483647, %v1982_v20  ;;  %v1999_v50 = vand.u32 2147483648, %v1982_v20 }
 0x318   : > { %2611 = vrcp.f32 %v3504_v37  ;;  %v3529_v45 = vadd.f32 %v3476_v51, %v1944_v14  ;;  %vm2008_vm3 = vweird.f32 %v1983_v6  ;;  %v2474_v53 = vmul.f32 -1.442695, %v3522_v40 }
 0x319   : > { %2613 = vrcp.f32 %v3508_v11  ;;  %v2012_v38 = vand.u32 2147483647, %v1983_v6  ;;  %v2014_v55 = vand.u32 2147483648, %v1983_v6  ;;  %v2000_v47 = vor.u32 1.1754944e-38, %v1999_v50 }
 0x31a   : > { %v2473_v1 = vmul.f32 -1.442695, %v3529_v45  ;;  %2615 = vpow2.f32 %v2474_v53  ;;  %v2029_v58 = vand.u32 2147483648, %v3508_v11  ;;  %v2027_v9 = vand.u32 2147483647, %v3508_v11 }
 0x31b   : > { %vm1998_vm8 = vcmp.eq.f32.partialorder %v1997_v59, 8.507059e+37  ;;  %vm2013_vm15 = vcmp.eq.f32.partialorder %v2012_v38, 8.507059e+37  ;;  %v2015_v12 = vor.u32 1.1754944e-38, %v2014_v55  ;;  %vm2023_vm0 = vweird.f32 %v3508_v11 }
 0x31c   : > { %v2608_v21 = vpop.eup %2607  ;;  %2617 = vpow2.f32 %v2473_v1  ;;  %v2030_v2 = vor.u32 1.1754944e-38, %v2029_v58  ;;  %vm2028_vm1 = vcmp.eq.f32.partialorder %v2027_v9, 8.507059e+37  ;;  %v2042_v39 = vand.u32 2147483647, %v3504_v37 }
 0x31d   : > { %v2610_v26 = vpop.eup %2609  ;;  %v1989_v32 = vmul.f32 %v2608_v21, %v1982_v20  ;;  %vm1994_vm4 = vweird.f32 %v2608_v21  ;;  %v2044_v30 = vand.u32 2147483648, %v3504_v37 }
 0x31e   : > { %v3526_v43 = vpop.eup %2611  ;;  %v2004_v28 = vmul.f32 %v2610_v26, %v1983_v6  ;;  %vm2009_vm5 = vweird.f32 %v2610_v26  ;;  %vm1995_vm6 = vmor %vm1993_vm2, %vm1994_vm4 }
 0x31f   : > { %v2614_v23 = vpop.eup %2613  ;;  %v1990_v48 = vsub.f32 1.0, %v1989_v32  ;;  %v2034_v51 = vmul.f32 %v3526_v43, %v3504_v37  ;;  %vm2010_vm9 = vmor %vm2008_vm3, %vm2009_vm5  ;;  %vm2039_vm11 = vweird.f32 %v3526_v43  ;;  %vm2043_vm3 = vcmp.eq.f32.partialorder %v2042_v39, 8.507059e+37 }
 0x320   : > { %v2005_v52 = vsub.f32 1.0, %v2004_v28  ;;  %v2019_v56 = vmul.f32 %v2614_v23, %v3508_v11  ;;  %vm2024_vm7 = vweird.f32 %v2614_v23  ;;  %v2616_v17 = vpop.eup %2615  ;;  %vm3565_vm13 = vmor %vm2038_vm12, %vm2039_vm11  ;;  %v2045_v50 = vor.u32 1.1754944e-38, %v2044_v30 }
 0x321   : > { %v1991_v61 = vmul.f32 %v2608_v21, %v1990_v48  ;;  %v2035_v16 = vsub.f32 1.0, %v2034_v51  ;;  %vm2025_vm14 = vmor %vm2023_vm0, %vm2024_vm7  ;;  %v1987_v25 = vadd.f32 1.0, %v2616_v17  ;;  %vm2115_vm0 = vcmask 7168  }
 0x322   : > { %v2006_v36 = vmul.f32 %v2610_v26, %v2005_v52  ;;  %v2020_v46 = vsub.f32 1.0, %v2019_v56  ;;  %v2618_v20 = vpop.eup %2617 }
 0x323   : > { %v1992_v0 = vadd.f32 %v2608_v21, %v1991_v61  ;;  %v1986_v27 = vadd.f32 1.0, %v2618_v20  ;;  %2619 = vrcp.f32 %v1987_v25  ;;  %v2074_v59 = vand.u32 2147483648, %v1987_v25 }
 0x324   : > { %v2007_v8 = vadd.f32 %v2610_v26, %v2006_v36  ;;  %v2021_v62 = vmul.f32 %v2614_v23, %v2020_v46  ;;  %v2072_v48 = vand.u32 2147483647, %v1987_v25  ;;  %vm2068_vm4 = vweird.f32 %v1987_v25 }
 0x325   : > { %v1996_v10 = vsel %vm1995_vm6, %v2608_v21, %v1992_v0  ;;  %2621 = vrcp.f32 %v1986_v27  ;;  %v2059_v53 = vand.u32 2147483648, %v1986_v27  ;;  %v2057_v52 = vand.u32 2147483647, %v1986_v27 }
 0x326   : > { %v2001_v22 = vsel %vm1998_vm8, %v2000_v47, %v1996_v10  ;;  %v2011_v13 = vsel %vm2010_vm9, %v2610_v26, %v2007_v8  ;;  %v2022_v41 = vadd.f32 %v2614_v23, %v2021_v62  ;;  %v2075_v56 = vor.u32 1.1754944e-38, %v2074_v59 }
 0x327   : > { %v2016_v31 = vsel %vm2013_vm15, %v2015_v12, %v2011_v13  ;;  %v3542_v18 = vmul.f32 %v2001_v22, %v3483_v44  ;;  %vm2053_vm7 = vweird.f32 %v1986_v27  ;;  %vm2073_vm8 = vcmp.eq.f32.partialorder %v2072_v48, 8.507059e+37  ;;  %v2112_v13 = vld [vmem:[%s3662_s7 + $0x8] sm:$0xff] }
 0x328   : > { %v2026_v7 = vsel %vm2025_vm14, %v2614_v23, %v2022_v41  ;;  %v3545_v24 = vmul.f32 %v2016_v31, %v3485_v42  ;;  %v2036_v42 = vmul.f32 %v3526_v43, %v2035_v16  ;;  %vm2058_vm15 = vcmp.eq.f32.partialorder %v2057_v52, 8.507059e+37 }
 0x329   : > { %v2031_v60 = vsel %vm2028_vm1, %v2030_v2, %v2026_v7  ;;  %v2092_v5 = vmul.f32 %v2086_v34, %v3542_v18  ;;  %v2620_v19 = vpop.eup %2619 }
 0x32a   : > { %v3552_v6 = vmul.f32 %v2031_v60, %v3487_v29  ;;  %v2093_v44 = vmul.f32 %v2087_v57, %v3545_v24  ;;  %v2037_v33 = vadd.f32 %v3526_v43, %v2036_v42  ;;  %v2064_v35 = vmul.f32 %v2620_v19, %v1987_v25 }
 0x32b   : > { %v2622_v63 = vpop.eup %2621  ;;  %vm2069_vm2 = vweird.f32 %v2620_v19 }
 0x32c   : > { %v2094_v11 = vmul.f32 %v2088_v15, %v3552_v6  ;;  %v2098_v4 = vadd.f32 %v2093_v44, %v2092_v5  ;;  %v2049_v14 = vmul.f32 %v2622_v63, %v1986_v27  ;;  %v2065_v26 = vsub.f32 1.0, %v2064_v35  ;;  %vm2070_vm6 = vmor %vm2068_vm4, %vm2069_vm2 }
 0x32d   : > { %v2041_v32 = vsel %vm3565_vm13, %v3526_v43, %v2037_v33  ;;  %vm2054_vm5 = vweird.f32 %v2622_v63  ;;  %v2060_v43 = vor.u32 1.1754944e-38, %v2059_v53 }
 0x32e   : > { %v2100_v49 = vsel %vm2099_vm10, %v2094_v11, 0.0  ;;  %v2050_v28 = vsub.f32 1.0, %v2049_v14  ;;  %v2066_v23 = vmul.f32 %v2620_v19, %v2065_v26  ;;  %v2046_v55 = vsel %vm2043_vm3, %v2045_v50, %v2041_v32  ;;  %vm2055_vm9 = vmor %vm2053_vm7, %vm2054_vm5  ;;  %v2147_v26 = vld [vmem:[%s3664_s9] sm:$0xff]  ;;  %v2148_v32 = vld [vmem:[%s3664_s9 + $0x8] sm:$0xff] }
 0x32f   : > { %v2101_v29 = vadd.f32 %v2100_v49, %v2098_v4  ;;  %v3573_v36 = vmul.f32 %v2046_v55, %v3480_v54 }
 0x330   : > { %v2051_v37 = vmul.f32 %v2622_v63, %v2050_v28  ;;  %v2067_v38 = vadd.f32 %v2620_v19, %v2066_v23  ;;  %v2154_v28 = vld [vmem:[%s3665_s10] sm:$0xff]  ;;  %v2155_v23 = vld [vmem:[%s3665_s10 + $0x8] sm:$0xff] }
 0x331   : > { %2102 = vadd.xlane.f32.xlu0 %v2101_v29  ;;  %v2095_v62 = vmul.f32 %v2086_v34, %v3573_v36 }
 0x332   : > { %v2052_v61 = vadd.f32 %v2622_v63, %v2051_v37  ;;  %v2071_v1 = vsel %vm2070_vm6, %v2620_v19, %v2067_v38 }
 0x333   : > { %v2076_v51 = vsel %vm2073_vm8, %v2075_v56, %v2071_v1  ;;  %vm2222_vm8 = vcmask 130048  }
 0x334   : > { %v2056_v46 = vsel %vm2055_vm9, %v2622_v63, %v2052_v61  ;;  %v3576_v0 = vmul.f32 %v2076_v51, %v3522_v40  ;;  %vm2288_vm9 = vcmask 257024  }
 0x335   : > { %v2061_v47 = vsel %vm2058_vm15, %v2060_v43, %v2056_v46  ;;  %vm2284_vm15 = vcmask 1043456  }
 0x336   : > { %v3579_v58 = vmul.f32 %v2061_v47, %v3529_v45  ;;  %v2097_v8 = vmul.f32 %v2088_v15, %v3576_v0  ;;  %v2111_v45 = vld [vmem:[%s3662_s7] sm:$0xff]  ;;  %v2125_v15 = vld [vmem:[#allocation3] sm:$0x1] }
 0x338   : > { %v2096_v54 = vmul.f32 %v2087_v57, %v3579_v58  ;;  %v2105_v10 = vsel %vm2099_vm10, %v2097_v8, 0.0 }
 0x33a   : > { %v2104_v9 = vadd.f32 %v2096_v54, %v2095_v62 }
 0x33c   : > { %v2106_v12 = vadd.f32 %v2105_v10, %v2104_v9 }
 0x33e   : > { %2107 = vadd.xlane.f32.xlu1 %v2106_v12 }
 0x3a4   : > { %v2103_v40 = vpop.xlane.xlu0 %2102 }
 0x3a5   : > { %v2109_v22 = vmul.f32 0.00390625, %v2103_v40 }
 0x3a7   : > { %v2113_v41 = vmul.f32 %v2111_v45, %v2109_v22 }
 0x3a9   : > { %v2116_v57 = vsel %vm2115_vm0, %v2113_v41, 0.0 }
 0x3b1   : > { %v2108_v34 = vpop.xlane.xlu1 %2107 }
 0x3b2   : > { %v2110_v17 = vmul.f32 0.00390625, %v2108_v34 }
 0x3b4   : > { %v2114_v3 = vmul.f32 %v2112_v13, %v2110_v17 }
 0x3b6   : > { %v2117_v16 = vsel %vm2115_vm0, %v2114_v3, 0.0 }
 0x3b7   : > { %v2118_v31 = vadd.f32 %v2117_v16, %v2116_v57 }
 0x3b9   : > { %v2119_v2 = vrot.slane %v2118_v31, 4 }
 0x3bb   : > { %v2120_v7 = vadd.f32 %v2119_v2, %v2118_v31  ;;  %v2216_v31 = vld [vmem:[%s3667_s12] sm:$0xf] }
 0x3bd   : > { %v2121_v25 = vrot.slane %v2120_v7, 2 }
 0x3bf   : > { %v2122_v20 = vadd.f32 %v2121_v25, %v2120_v7 }
 0x3c1   : > { %v2123_v60 = vrot.slane %v2122_v20, 1 }
 0x3c3   : > { %v2124_v5 = vadd.f32 %v2123_v60, %v2122_v20 }
 0x3c5   : > { %v2126_v27 = vadd.f32 %v2125_v15, %v2124_v5 }
 0x3c7   : > { %v2475_v44 = vmul.f32 -1.442695, %v2126_v27 }
 0x3c9   : > { %2623 = vpow2.f32 %v2475_v44 }
 0x3cf   : > { %v2624_v42 = vpop.eup %2623 }
 0x3d0   : > { %v2130_v11 = vadd.f32 1.0, %v2624_v42 }
 0x3d2   : > { %2625 = vrcp.f32 %v2130_v11  ;;  %v2142_v33 = vand.u32 2147483648, %v2130_v11  ;;  %v2140_v35 = vand.u32 2147483647, %v2130_v11  ;;  %vm2136_vm1 = vweird.f32 %v2130_v11 }
 0x3d4   : > { %v2143_v39 = vor.u32 1.1754944e-38, %v2142_v33  ;;  %vm2141_vm11 = vcmp.eq.f32.partialorder %v2140_v35, 8.507059e+37  ;;  %v2272_v35 = vld.sshfl [vmem:[#allocation1] sm:$0xff pattern:$0x75316420] }
 0x3d8   : > { %v2626_v4 = vpop.eup %2625 }
 0x3d9   : > { %v2132_v49 = vmul.f32 %v2626_v4, %v2130_v11  ;;  %vm2137_vm14 = vweird.f32 %v2626_v4 }
 0x3da   : > { %vm2138_vm10 = vmor %vm2136_vm1, %vm2137_vm14 }
 0x3db   : > { %v2133_v19 = vsub.f32 1.0, %v2132_v49 }
 0x3dd   : > { %v2134_v29 = vmul.f32 %v2626_v4, %v2133_v19 }
 0x3df   : > { %v2135_v63 = vadd.f32 %v2626_v4, %v2134_v29 }
 0x3e1   : > { %v2139_v30 = vsel %vm2138_vm10, %v2626_v4, %v2135_v63  ;;  %v2273_v4 = vld.sshfl [vmem:[#allocation1 + $0x8] sm:$0xff pattern:$0x75316420] }
 0x3e2   : > { %v2144_v21 = vsel %vm2141_vm11, %v2143_v39, %v2139_v30 }
 0x3e3   : > { %v2146_v14 = vmul.f32 %v2144_v21, %v2126_v27 }
 0x3e5   : > { %v2149_v59 = vperm.slane %v2146_v14, 0 }
 0x3e7   : > { %v2150_v48 = vmul.f32 %v2149_v59, %v2147_v26  ;;  %v2151_v50 = vmul.f32 %v2149_v59, %v2148_v32 }
 0x3e9   : > { %v2156_v53 = vadd.f32 %v2154_v28, %v2150_v48  ;;  %v2157_v37 = vadd.f32 %v2155_v23, %v2151_v50 }
 0x3eb   : > { %v2476_v52 = vmul.f32 -1.442695, %v2156_v53  ;;  %v2477_v38 = vmul.f32 -1.442695, %v2157_v37 }
 0x3ed   : > { %2627 = vpow2.f32 %v2476_v52 }
 0x3ee   : > { %2629 = vpow2.f32 %v2477_v38 }
 0x3f3   : > { %v2628_v55 = vpop.eup %2627 }
 0x3f4   : > { %v2630_v56 = vpop.eup %2629  ;;  %v2164_v61 = vadd.f32 1.0, %v2628_v55 }
 0x3f5   : > { %v2165_v1 = vadd.f32 1.0, %v2630_v56 }
 0x3f6   : > { %2631 = vrcp.f32 %v2164_v61  ;;  %v2177_v62 = vand.u32 2147483648, %v2164_v61  ;;  %v2175_v10 = vand.u32 2147483647, %v2164_v61  ;;  %vm2171_vm13 = vweird.f32 %v2164_v61 }
 0x3f7   : > { %2633 = vrcp.f32 %v2165_v1  ;;  %v2192_v41 = vand.u32 2147483648, %v2165_v1  ;;  %vm2186_vm5 = vweird.f32 %v2165_v1  ;;  %v2190_v17 = vand.u32 2147483647, %v2165_v1 }
 0x3f8   : > { %v2178_v22 = vor.u32 1.1754944e-38, %v2177_v62  ;;  %vm2176_vm3 = vcmp.eq.f32.partialorder %v2175_v10, 8.507059e+37 }
 0x3f9   : > { %v2193_v57 = vor.u32 1.1754944e-38, %v2192_v41  ;;  %vm2191_vm7 = vcmp.eq.f32.partialorder %v2190_v17, 8.507059e+37 }
 0x3fc   : > { %v2632_v43 = vpop.eup %2631 }
 0x3fd   : > { %v2634_v51 = vpop.eup %2633  ;;  %v2167_v46 = vmul.f32 %v2632_v43, %v2164_v61  ;;  %vm2172_vm12 = vweird.f32 %v2632_v43 }
 0x3fe   : > { %v2182_v47 = vmul.f32 %v2634_v51, %v2165_v1  ;;  %vm2173_vm2 = vmor %vm2171_vm13, %vm2172_vm12  ;;  %vm2187_vm4 = vweird.f32 %v2634_v51 }
 0x3ff   : > { %v2168_v8 = vsub.f32 1.0, %v2167_v46  ;;  %vm2188_vm6 = vmor %vm2186_vm5, %vm2187_vm4 }
 0x400   : > { %v2183_v54 = vsub.f32 1.0, %v2182_v47 }
 0x401   : > { %v2169_v9 = vmul.f32 %v2632_v43, %v2168_v8 }
 0x402   : > { %v2184_v40 = vmul.f32 %v2634_v51, %v2183_v54 }
 0x403   : > { %v2170_v12 = vadd.f32 %v2632_v43, %v2169_v9 }
 0x404   : > { %v2185_v34 = vadd.f32 %v2634_v51, %v2184_v40 }
 0x405   : > { %v2174_v45 = vsel %vm2173_vm2, %v2632_v43, %v2170_v12 }
 0x406   : > { %v2179_v13 = vsel %vm2176_vm3, %v2178_v22, %v2174_v45  ;;  %v2189_v3 = vsel %vm2188_vm6, %v2634_v51, %v2185_v34 }
 0x407   : > { %2198 = vperm.xlu2 %2573, %v2179_v13   ;;  %v2194_v16 = vsel %vm2191_vm7, %v2193_v57, %v2189_v3 }
 0x40f   : > { %2203 = vperm.xlu2 %2573, %v2194_v16  }
 0x417   : > { %2219 = vperm.xlu2 %2573, %v2216_v31  }
 0x461   : > { %v2199_v2 = vpop.permute.xlu2 %2198 }
 0x462   : > { %v2206_v7 = vmul.f32 %v2199_v2, %v3542_v18  ;;  %v2207_v25 = vmul.f32 %v2199_v2, %v3545_v24  ;;  %v2208_v60 = vmul.f32 %v2199_v2, %v3552_v6  ;;  %v2215_v18 = vld [vmem:[%s3666_s11] sm:$0x3] }
 0x469   : > { %v2204_v20 = vpop.permute.xlu2 %2203 }
 0x46a   : > { %v2209_v15 = vmul.f32 %v2204_v20, %v3573_v36  ;;  %v2210_v5 = vmul.f32 %v2204_v20, %v3579_v58  ;;  %v2211_v27 = vmul.f32 %v2204_v20, %v3576_v0  ;;  %v2274_v58 = vld.sshfl [vmem:[#allocation1 + $0x10] sm:$0xff pattern:$0x75316420] }
 0x46c   : > { %v2212_v44 = vpack.c.bf16 %v2209_v15, %v2206_v7  ;;  %v2213_v42 = vpack.c.bf16 %v2210_v5, %v2207_v25  ;;  %v2214_v11 = vpack.c.bf16 %v2211_v27, %v2208_v60 }
 0x46e   : > { %2233 = vmatpush.bf16.msra.mxu3 %v2212_v44  ;;  %2246 = vmatpush.bf16.msrb.mxu0 %v2213_v42 }
 0x46f   : > { %2259 = vmatpush.bf16.msrb.mxu1 %v2214_v11 }
 0x471   : > { %2478 = vmatmul.msk.bf16.vlgmr.msra.gmra.mxu3 %vm2222_vm8, %v2215_v18  ;;  %2479 = vmatmul.msk.bf16.vlgmr.msrb.gmra.mxu0 %vm2222_vm8, %v2215_v18  ;;  %v2220_v24 = vpop.permute.xlu2 %2219 }
 0x472   : > { %2480 = vmatmul.msk.bf16.vlgmr.msrb.gmra.mxu1 %vm2222_vm8, %v2215_v18 }
 0x4ee   : > { %v2248_v6 = vpop.f32.mrf.mxu0 }
 0x4ef   : > { %v2249_v36 = vadd.f32 %v2248_v6, %v2220_v24  ;;  %v2261_v0 = vpop.f32.mrf.mxu1 }
 0x4f0   : > { %v2262_v49 = vadd.f32 %v2261_v0, %v2220_v24 }
 0x4f1   : > { %v2279_v33 = vadd.f32 %v2273_v4, %v2249_v36 }
 0x4f2   : > { %v2280_v19 = vadd.f32 %v2274_v58, %v2262_v49 }
 0x4f3   : > { %v2283_v30 = vrot.slane %v2279_v33, 4 }
 0x4f4   : > { %v2235_v29 = vpop.f32.mrf.mxu3  ;;  %2289 = vst.msk [vmem:[%s477_s19 + $0x8] sm:$0xf] %vm2288_vm9, %v2280_v19 }
 0x4f5   : > { %v2236_v63 = vadd.f32 %v2235_v29, %v2220_v24 }
 0x4f6   : > { %v2250_v39 = vpop.f32.mrf.mxu0 }
 0x4f7   : > { %v2278_v21 = vadd.f32 %v2272_v35, %v2236_v63  ;;  %v2263_v14 = vpop.f32.mrf.mxu1 }
 0x4f9   : > { %v2285_v26 = vsel %vm2284_vm15, %v2278_v21, %v2283_v30 }
 0x4fa   : > { %2287 = vst [vmem:[%s477_s19] sm:$0xff] %v2285_v26 }
 0x4fb   : > { %2662 = shalt.err (!%p2659_p3)
}
 0x4fc   : > { %2496 = dma.vmem_to_hbm [thread:$0]  (%p2834_p5), %s2305_s30, 192, %s2307_s8, %s2291_s29   ;;  %v2237_v32 = vpop.f32.mrf.mxu3 }
 0x4fd PF: > { %p2502_p4 = scmp.ge.s32.totalorder %s2697_s18, 2  ;;  %s2318_s21 = sand.u32 1, %s2685_s15  }
 0x4fe   : > { %s2319_s19 = scalar_lea.sflag [#allocation5], %s2318_s21 }
 0x4ff   : > { %p2499_p7 = pnand %p2502_p4, %p2838_p6 }
 0x501   : > { %p2500_p8 = pneg %p2499_p7 }
 0x503   : > { %2680 = dma.done.wait (%p2500_p8), %s2319_s19, 192  }
 0x504   : > { %2682 = vsyncadd (%p2500_p8), %s2319_s19, 4294967104  ;;  %p26_p9 = scmp.ge.s32.totalorder %s2821_s20, 4   ;;  %s3697_s15 = smov %s2689_s16 }
 0x505   : > { %s3698_s16 = smov %s2693_s17  ;;  %s3699_s17 = smov %s2832_s23 }
 0x506   : > { %s3700_s18 = smov %s2821_s20  ;;  %28 = sbr.rel (!%p26_p9) target bundleno = 7 (0x7), region = 132 }
 0x50b   :  { %2325 = vsyncpa [#allocation5], 1 }
 0x50c   :  { %2327 = vsyncpa [#allocation5 + $0x1], 1 }

</bundles_post_ra>
